<compile_context>
chip_gen: v5e
topology: v5e:2x2
jax: 0.10.0
libtpu: 0.0.40
codegen_flags: <defaults>
</compile_context>

<pallas_src>
import functools

import jax
import jax.numpy as jnp
from jax.experimental import pallas as pl
from jax.experimental.pallas import tpu as pltpu


def _round_up(n, m):
    return ((n + m - 1) // m) * m


# --------------------------------------------------------------------------
# Kernel
# --------------------------------------------------------------------------
def _mlp_kernel(x_ref, w1_ref, b1_ref, w2_ref, b2_ref, w3_ref, b3_ref,
                w4_ref, b4_ref, o_ref):
    # x may arrive as f32 (passthrough path) or bf16 (padded path); cast once.
    x = x_ref[...].astype(jnp.bfloat16)
    # Layer 1: Linear(F_pad, 1024) + ReLU  (bf16 operands, f32 accumulation)
    h = jnp.dot(x, w1_ref[...], preferred_element_type=jnp.float32)
    h = jnp.maximum(h + b1_ref[...], 0.0).astype(jnp.bfloat16)
    # Layer 2: Linear(1024, 512) + ReLU
    h = jnp.dot(h, w2_ref[...], preferred_element_type=jnp.float32)
    h = jnp.maximum(h + b2_ref[...], 0.0).astype(jnp.bfloat16)
    # Layer 3: Linear(512, 128) + ReLU
    h = jnp.dot(h, w3_ref[...], preferred_element_type=jnp.float32)
    h = jnp.maximum(h + b3_ref[...], 0.0).astype(jnp.bfloat16)
    # Layer 4: Linear(128, C_pad)  (no activation; padded lanes carry zeros)
    out = jnp.dot(h, w4_ref[...], preferred_element_type=jnp.float32)
    o_ref[...] = (out + b4_ref[...]).astype(o_ref.dtype)


# --------------------------------------------------------------------------
# Generation-aware VMEM cap (queried once)
# --------------------------------------------------------------------------
_VMEM_CAP = None


def _vmem_cap_bytes():
    global _VMEM_CAP
    if _VMEM_CAP is None:
        phys = None
        try:
            info = pltpu.get_tpu_info()
            phys = int(getattr(info, "vmem_capacity_bytes"))
        except Exception:
            phys = None
        if not phys:
            try:
                kind = jax.devices()[0].device_kind.lower()
                phys = (64 << 20) if ("v7" in kind or "7x" in kind) else (128 << 20)
            except Exception:
                phys = 64 << 20  # conservative
        _VMEM_CAP = (phys * 3) // 4  # ~48 MiB on v7x, ~96 MiB on v5e/v6e
    return _VMEM_CAP


# --------------------------------------------------------------------------
# One-time parameter preparation (pad to lane-dense dims, cast to bf16)
# --------------------------------------------------------------------------
def prepare_params(params):
    w1, b1 = params["fc1"]
    w2, b2 = params["fc2"]
    w3, b3 = params["fc3"]
    w4, b4 = params["fc4"]
    F = int(w1.shape[0])
    C = int(w4.shape[1])
    F_pad = _round_up(max(F, 128), 128)   # contraction dim of layer 1
    C_pad = _round_up(max(C, 128), 128)   # output lanes (avoid masked vst)

    w1_p = jnp.pad(w1, ((0, F_pad - F), (0, 0))).astype(jnp.bfloat16)
    w2_b = w2.astype(jnp.bfloat16)
    w3_b = w3.astype(jnp.bfloat16)
    w4_p = jnp.pad(w4, ((0, 0), (0, C_pad - C))).astype(jnp.bfloat16)
    b1_f = b1.astype(jnp.float32)
    b2_f = b2.astype(jnp.float32)
    b3_f = b3.astype(jnp.float32)
    b4_p = jnp.pad(b4, ((0, 0), (0, C_pad - C))).astype(jnp.float32)
    return (w1_p, b1_f, w2_b, b2_f, w3_b, b3_f, w4_p, b4_p, F, C, F_pad, C_pad)


_PREP_CACHE = {}  # keyed on identity of the raw param buffers (demo-grade cache)


def _prepare_cached(params):
    key = tuple(id(t) for pair in params.values() for t in pair)
    prep = _PREP_CACHE.get(key)
    if prep is None:
        prep = prepare_params(params)
        _PREP_CACHE[key] = prep
    return prep


# --------------------------------------------------------------------------
# Forward
# --------------------------------------------------------------------------
@functools.partial(
    jax.jit,
    static_argnames=("F", "C", "F_pad", "C_pad", "batch_tile", "vmem_cap"))
def _forward_impl(x, w1_p, b1_f, w2_b, b2_f, w3_b, b3_f, w4_p, b4_p, *,
                  F, C, F_pad, C_pad, batch_tile, vmem_cap):
    B = x.shape[0]

    # ---- batch-tile selection ----------------------------------------------
    if B <= 64:
        # Tiny / latency-bound: pad only to the bf16 sublane pack (16 rows).
        bt = _round_up(max(B, 16), 16)
    else:
        bt = min(batch_tile, _round_up(B, 128))
        if B > 128:
            # Keep >= 2 grid steps so both v7x TensorCores get work; on
            # v5e/v6e the extra step costs only ~0.35 us.
            bt = min(bt, _round_up(-(-B // 2), 128))
    B_pad = _round_up(B, bt)

    # ---- x ingestion: skip the pad+cast round trip when already lane-dense --
    if B_pad == B and F_pad == F:
        x_p = x                                  # kernel casts to bf16 itself
    else:
        # pad + convert fuse into a single XLA pass producing a bf16 slab
        x_p = jnp.pad(x, ((0, B_pad - B), (0, F_pad - F))).astype(jnp.bfloat16)

    # ---- VMEM budget ---------------------------------------------------------
    # weights/biases are single-buffered (invariant); x/out tiles double-buffered
    w_bytes = 2 * (F_pad * 1024 + 1024 * 512 + 512 * 128 + 128 * C_pad)  # bf16
    b_bytes = 4 * (1024 + 512 + 128 + C_pad)
    x_tile_bytes = bt * F_pad * x_p.dtype.itemsize
    o_tile_bytes = bt * C_pad * 4
    inter_bytes = bt * (1024 + 512 + 128) * (4 + 2)
    vmem_est = 2 * (x_tile_bytes + o_tile_bytes) + w_bytes + b_bytes + inter_bytes
    vmem_limit = int(min(max(int(1.5 * vmem_est), 32 << 20), vmem_cap))
    # TODO(synk): K-tile layer 1 (reduction grid axis over F_pad + VMEM
    # accumulator) once w_bytes alone approaches vmem_cap (huge input_size).

    def invariant(arr):
        # Grid-invariant block: DMA'd once, resident across all batch tiles;
        # single-buffered so it does not pay a 2x VMEM footprint.
        return pl.BlockSpec(arr.shape, lambda i: (0, 0),
                            pipeline_mode=pl.Buffered(1))

    grid = (B_pad // bt,)
    out = pl.pallas_call(
        _mlp_kernel,
        out_shape=jax.ShapeDtypeStruct((B_pad, C_pad), jnp.float32),
        grid_spec=pltpu.PrefetchScalarGridSpec(
            num_scalar_prefetch=0,
            grid=grid,
            in_specs=[
                pl.BlockSpec((bt, F_pad), lambda i: (i, 0)),  # x tile
                invariant(w1_p), invariant(b1_f),
                invariant(w2_b), invariant(b2_f),
                invariant(w3_b), invariant(b3_f),
                invariant(w4_p), invariant(b4_p),
            ],
            out_specs=pl.BlockSpec((bt, C_pad), lambda i: (i, 0)),
        ),
        compiler_params=pltpu.CompilerParams(
            dimension_semantics=("parallel",),
            vmem_limit_bytes=vmem_limit,
        ),
    )(x_p, w1_p, b1_f, w2_b, b2_f, w3_b, b3_f, w4_p, b4_p)

    return out[:B, :C]


def mono_task_nns_forward(x, params, *, batch_tile=512):
    """x: [B, input_size] float32. params: dict name -> (w[in,out], b[1,out])."""
    (w1_p, b1_f, w2_b, b2_f, w3_b, b3_f, w4_p, b4_p,
     F, C, F_pad, C_pad) = _prepare_cached(params)
    return _forward_impl(
        x, w1_p, b1_f, w2_b, b2_f, w3_b, b3_f, w4_p, b4_p,
        F=F, C=C, F_pad=F_pad, C_pad=C_pad,
        batch_tile=batch_tile, vmem_cap=_vmem_cap_bytes())


# --------------------------------------------------------------------------
# Params / reference / demo
# --------------------------------------------------------------------------
def init_params(input_size, num_sex_classes, seed=0):
    """Deterministic synthetic parameter init (PyTorch-like uniform fan-in)."""
    key = jax.random.PRNGKey(seed)
    dims = [(input_size, 1024), (1024, 512), (512, 128), (128, num_sex_classes)]
    names = ["fc1", "fc2", "fc3", "fc4"]
    params = {}
    for name, (fan_in, fan_out) in zip(names, dims):
        key, kw, kb = jax.random.split(key, 3)
        bound = 1.0 / (fan_in ** 0.5)
        w = jax.random.uniform(kw, (fan_in, fan_out), jnp.float32, -bound, bound)
        b = jax.random.uniform(kb, (1, fan_out), jnp.float32, -bound, bound)
        params[name] = (w, b)
    return params


def _reference_forward(x, params):
    # Mirrors kernel numerics: bf16 matmul operands, f32 accumulation,
    # f32 bias-add/ReLU.
    h = x.astype(jnp.bfloat16)
    for name in ("fc1", "fc2", "fc3"):
        w, b = params[name]
        h = jnp.dot(h, w.astype(jnp.bfloat16), preferred_element_type=jnp.float32)
        h = jnp.maximum(h + b, 0.0).astype(jnp.bfloat16)
    w, b = params["fc4"]
    return jnp.dot(h, w.astype(jnp.bfloat16),
                   preferred_element_type=jnp.float32) + b


if __name__ == "__main__":
    batch = 8
    input_size = 32
    num_sex_classes = 2

    key = jax.random.PRNGKey(0)
    x = jax.random.normal(key, (batch, input_size), dtype=jnp.float32)

    params = init_params(input_size, num_sex_classes, seed=0)

    out = mono_task_nns_forward(x, params)
    out = jax.block_until_ready(out)

    ref = _reference_forward(x, params)
    assert out.shape == (batch, num_sex_classes)
    assert jnp.allclose(out, ref, atol=2e-3, rtol=2e-3), "mismatch vs reference"

    print("KERNEL_OK")
</pallas_src>

<mosaic_0001>
module attributes {stable_mosaic.version = 11 : i64} {
  func.func @_mlp_kernel(%arg0: i32, %arg1: memref<16x128xbf16, #tpu.memory_space<vmem>>, %arg2: memref<128x1024xbf16, #tpu.memory_space<vmem>>, %arg3: memref<1x1024xf32, #tpu.memory_space<vmem>>, %arg4: memref<1024x512xbf16, #tpu.memory_space<vmem>>, %arg5: memref<1x512xf32, #tpu.memory_space<vmem>>, %arg6: memref<512x128xbf16, #tpu.memory_space<vmem>>, %arg7: memref<1x128xf32, #tpu.memory_space<vmem>>, %arg8: memref<128x128xbf16, #tpu.memory_space<vmem>>, %arg9: memref<1x128xf32, #tpu.memory_space<vmem>>, %arg10: memref<16x128xf32, #tpu.memory_space<vmem>>) attributes {dimension_semantics = [#tpu.dimension_semantics<parallel>], iteration_bounds = array<i64: 1>, scalar_prefetch = 0 : i64, scratch_operands = 0 : i64, tpu.core_type = #tpu.core_type<tc>, window_params = [{transform_indices = @transform_0, window_bounds = array<i64: 16, 128>}, {pipeline_mode = #tpu.pipeline_mode<synchronous>, transform_indices = @transform_1, window_bounds = array<i64: 128, 1024>}, {pipeline_mode = #tpu.pipeline_mode<synchronous>, transform_indices = @transform_2, window_bounds = array<i64: 1, 1024>}, {pipeline_mode = #tpu.pipeline_mode<synchronous>, transform_indices = @transform_3, window_bounds = array<i64: 1024, 512>}, {pipeline_mode = #tpu.pipeline_mode<synchronous>, transform_indices = @transform_4, window_bounds = array<i64: 1, 512>}, {pipeline_mode = #tpu.pipeline_mode<synchronous>, transform_indices = @transform_5, window_bounds = array<i64: 512, 128>}, {pipeline_mode = #tpu.pipeline_mode<synchronous>, transform_indices = @transform_6, window_bounds = array<i64: 1, 128>}, {pipeline_mode = #tpu.pipeline_mode<synchronous>, transform_indices = @transform_7, window_bounds = array<i64: 128, 128>}, {pipeline_mode = #tpu.pipeline_mode<synchronous>, transform_indices = @transform_8, window_bounds = array<i64: 1, 128>}, {transform_indices = @transform_9, window_bounds = array<i64: 16, 128>}]} {
    %c0 = arith.constant 0 : index
    %c0_0 = arith.constant 0 : index
    %0 = vector.load %arg1[%c0, %c0_0] : memref<16x128xbf16, #tpu.memory_space<vmem>>, vector<16x128xbf16>
    %c0_1 = arith.constant 0 : index
    %c0_2 = arith.constant 0 : index
    %1 = vector.load %arg2[%c0_1, %c0_2] : memref<128x1024xbf16, #tpu.memory_space<vmem>>, vector<128x1024xbf16>
    %cst = arith.constant dense<0.000000e+00> : vector<16x1024xf32>
    %2 = tpu.matmul %0, %1, %cst {dimension_numbers = #tpu.dot_dimension_numbers<[1], [0], [0], [1], [0, 0, 1, 1], [], []>} : vector<16x128xbf16>, vector<128x1024xbf16>, vector<16x1024xf32> -> vector<16x1024xf32>
    %c0_3 = arith.constant 0 : index
    %c0_4 = arith.constant 0 : index
    %3 = vector.load %arg3[%c0_3, %c0_4] : memref<1x1024xf32, #tpu.memory_space<vmem>>, vector<1x1024xf32>
    %4 = vector.broadcast %3 : vector<1x1024xf32> to vector<16x1024xf32>
    %5 = arith.addf %2, %4 : vector<16x1024xf32>
    %cst_5 = arith.constant 0.000000e+00 : f32
    %6 = vector.broadcast %cst_5 : f32 to vector<16x1024xf32>
    %7 = arith.maximumf %5, %6 : vector<16x1024xf32>
    %8 = arith.truncf %7 : vector<16x1024xf32> to vector<16x1024xbf16>
    %c0_6 = arith.constant 0 : index
    %c0_7 = arith.constant 0 : index
    %9 = vector.load %arg4[%c0_6, %c0_7] : memref<1024x512xbf16, #tpu.memory_space<vmem>>, vector<1024x512xbf16>
    %cst_8 = arith.constant dense<0.000000e+00> : vector<16x512xf32>
    %10 = tpu.matmul %8, %9, %cst_8 {dimension_numbers = #tpu.dot_dimension_numbers<[1], [0], [0], [1], [0, 0, 1, 1], [], []>} : vector<16x1024xbf16>, vector<1024x512xbf16>, vector<16x512xf32> -> vector<16x512xf32>
    %c0_9 = arith.constant 0 : index
    %c0_10 = arith.constant 0 : index
    %11 = vector.load %arg5[%c0_9, %c0_10] : memref<1x512xf32, #tpu.memory_space<vmem>>, vector<1x512xf32>
    %12 = vector.broadcast %11 : vector<1x512xf32> to vector<16x512xf32>
    %13 = arith.addf %10, %12 : vector<16x512xf32>
    %cst_11 = arith.constant 0.000000e+00 : f32
    %14 = vector.broadcast %cst_11 : f32 to vector<16x512xf32>
    %15 = arith.maximumf %13, %14 : vector<16x512xf32>
    %16 = arith.truncf %15 : vector<16x512xf32> to vector<16x512xbf16>
    %c0_12 = arith.constant 0 : index
    %c0_13 = arith.constant 0 : index
    %17 = vector.load %arg6[%c0_12, %c0_13] : memref<512x128xbf16, #tpu.memory_space<vmem>>, vector<512x128xbf16>
    %cst_14 = arith.constant dense<0.000000e+00> : vector<16x128xf32>
    %18 = tpu.matmul %16, %17, %cst_14 {dimension_numbers = #tpu.dot_dimension_numbers<[1], [0], [0], [1], [0, 0, 1, 1], [], []>} : vector<16x512xbf16>, vector<512x128xbf16>, vector<16x128xf32> -> vector<16x128xf32>
    %c0_15 = arith.constant 0 : index
    %c0_16 = arith.constant 0 : index
    %19 = vector.load %arg7[%c0_15, %c0_16] : memref<1x128xf32, #tpu.memory_space<vmem>>, vector<1x128xf32>
    %20 = vector.broadcast %19 : vector<1x128xf32> to vector<16x128xf32>
    %21 = arith.addf %18, %20 : vector<16x128xf32>
    %cst_17 = arith.constant 0.000000e+00 : f32
    %22 = vector.broadcast %cst_17 : f32 to vector<16x128xf32>
    %23 = arith.maximumf %21, %22 : vector<16x128xf32>
    %24 = arith.truncf %23 : vector<16x128xf32> to vector<16x128xbf16>
    %c0_18 = arith.constant 0 : index
    %c0_19 = arith.constant 0 : index
    %25 = vector.load %arg8[%c0_18, %c0_19] : memref<128x128xbf16, #tpu.memory_space<vmem>>, vector<128x128xbf16>
    %cst_20 = arith.constant dense<0.000000e+00> : vector<16x128xf32>
    %26 = tpu.matmul %24, %25, %cst_20 {dimension_numbers = #tpu.dot_dimension_numbers<[1], [0], [0], [1], [0, 0, 1, 1], [], []>} : vector<16x128xbf16>, vector<128x128xbf16>, vector<16x128xf32> -> vector<16x128xf32>
    %c0_21 = arith.constant 0 : index
    %c0_22 = arith.constant 0 : index
    %27 = vector.load %arg9[%c0_21, %c0_22] : memref<1x128xf32, #tpu.memory_space<vmem>>, vector<1x128xf32>
    %28 = vector.broadcast %27 : vector<1x128xf32> to vector<16x128xf32>
    %29 = arith.addf %26, %28 : vector<16x128xf32>
    %c0_23 = arith.constant 0 : index
    %c0_24 = arith.constant 0 : index
    %30 = vector.load %arg10[%c0_23, %c0_24] : memref<16x128xf32, #tpu.memory_space<vmem>>, vector<16x128xf32>
    tpu.vector_store %arg10[%c0_23, %c0_24], %29 {strides = array<i32>} : memref<16x128xf32, #tpu.memory_space<vmem>>, vector<16x128xf32>,
    return
  }
  func.func @transform_0(%arg0: i32) -> (i32, i32) {
    %c0_i32 = arith.constant 0 : i32
    %c0_i32_0 = arith.constant 0 : i32
    return %arg0, %c0_i32 : i32, i32
  }
  func.func @transform_1(%arg0: i32) -> (i32, i32) {
    %c0_i32 = arith.constant 0 : i32
    %c0_i32_0 = arith.constant 0 : i32
    %c0_i32_1 = arith.constant 0 : i32
    return %c0_i32, %c0_i32_0 : i32, i32
  }
  func.func @transform_2(%arg0: i32) -> (i32, i32) {
    %c0_i32 = arith.constant 0 : i32
    %c0_i32_0 = arith.constant 0 : i32
    %c0_i32_1 = arith.constant 0 : i32
    return %c0_i32, %c0_i32_0 : i32, i32
  }
  func.func @transform_3(%arg0: i32) -> (i32, i32) {
    %c0_i32 = arith.constant 0 : i32
    %c0_i32_0 = arith.constant 0 : i32
    %c0_i32_1 = arith.constant 0 : i32
    return %c0_i32, %c0_i32_0 : i32, i32
  }
  func.func @transform_4(%arg0: i32) -> (i32, i32) {
    %c0_i32 = arith.constant 0 : i32
    %c0_i32_0 = arith.constant 0 : i32
    %c0_i32_1 = arith.constant 0 : i32
    return %c0_i32, %c0_i32_0 : i32, i32
  }
  func.func @transform_5(%arg0: i32) -> (i32, i32) {
    %c0_i32 = arith.constant 0 : i32
    %c0_i32_0 = arith.constant 0 : i32
    %c0_i32_1 = arith.constant 0 : i32
    return %c0_i32, %c0_i32_0 : i32, i32
  }
  func.func @transform_6(%arg0: i32) -> (i32, i32) {
    %c0_i32 = arith.constant 0 : i32
    %c0_i32_0 = arith.constant 0 : i32
    %c0_i32_1 = arith.constant 0 : i32
    return %c0_i32, %c0_i32_0 : i32, i32
  }
  func.func @transform_7(%arg0: i32) -> (i32, i32) {
    %c0_i32 = arith.constant 0 : i32
    %c0_i32_0 = arith.constant 0 : i32
    %c0_i32_1 = arith.constant 0 : i32
    return %c0_i32, %c0_i32_0 : i32, i32
  }
  func.func @transform_8(%arg0: i32) -> (i32, i32) {
    %c0_i32 = arith.constant 0 : i32
    %c0_i32_0 = arith.constant 0 : i32
    %c0_i32_1 = arith.constant 0 : i32
    return %c0_i32, %c0_i32_0 : i32, i32
  }
  func.func @transform_9(%arg0: i32) -> (i32, i32) {
    %c0_i32 = arith.constant 0 : i32
    %c0_i32_0 = arith.constant 0 : i32
    return %arg0, %c0_i32 : i32, i32
  }
}

</mosaic_0001>

<bundles_post_ra>
// kernel: _forward_impl.1
= control target key start
LH: loop header
LB: loop body
LE: loop exit
PB: predicated region body
PF: predicated region fallthrough
CT: control target
= control target key end

     0   :  { %14 = vsyncpa [#allocation3], 0  ;;  %s5185_s0 = inlined_call_operand.vmem [shape: bf16[16,128], index: 0, kind: input, shape index: {}]   ;;  %s5186_s1 = inlined_call_operand.hbm [shape: bf16[128,1024], index: 1, kind: input, shape index: {}]   ;;  %s5187_s2 = inlined_call_operand.vmem [shape: f32[1,1024], index: 2, kind: input, shape index: {}]   ;;  %s5188_s3 = inlined_call_operand.hbm [shape: bf16[1024,512], index: 3, kind: input, shape index: {}]   ;;  %s5189_s4 = inlined_call_operand.vmem [shape: f32[1,512], index: 4, kind: input, shape index: {}]   ;;  %s5190_s5 = inlined_call_operand.hbm [shape: bf16[512,128], index: 5, kind: input, shape index: {}]   ;;  %s5191_s6 = inlined_call_operand.vmem [shape: f32[1,128], index: 6, kind: input, shape index: {}]   ;;  %s5192_s7 = inlined_call_operand.hbm [shape: bf16[128,128], index: 7, kind: input, shape index: {}]   ;;  %s5193_s8 = inlined_call_operand.vmem [shape: f32[1,128], index: 8, kind: input, shape index: {}]   ;;  %s5194_s9 = inlined_call_operand.vmem [shape: f32[16,128], index: 9, kind: output, shape index: {}]  }
   0x1   :  { %15 = vsyncpa [#allocation5], 0  ;;  %s38_s11 = sshll.u32 %s5188_s3, 4  ;;  %s39_s11 = int_to_ptr.hbm [resolvable:$true] %s38_s11 }
   0x2   :  { %16 = vsyncpa [#allocation8], 0  ;;  %s4976_s12 = smov [#allocation4]   ;;  %s23_s16 = sshll.u32 %s5186_s1, 4  ;;  %s24_s16 = int_to_ptr.hbm [resolvable:$true] %s23_s16 }
   0x3   :  { %s40_s13 = sshll.u32 %s4976_s12, 4  ;;  %s4977_s17 = smov 256   ;;  %s41_s13 = int_to_ptr.vmem [resolvable:$true] %s40_s13 }
   0x4   :  { %s4978_s18 = smov 16   ;;  %s4979_s19 = smov [#allocation2]  }
   0x5   :  { %46 = dma.hbm_to_vmem [thread:$0]  %s39_s11, 32768, %s41_s13, [#allocation5], %s4977_s17, %s4977_s17, %s4978_s18  }
   0x6   :  { %s25_s20 = sshll.u32 %s4979_s19, 4  ;;  %s4980_s21 = smov 512   ;;  %s26_s20 = int_to_ptr.vmem [resolvable:$true] %s25_s20 }
   0x7   :  { %s4981_s22 = smov 32   ;;  %s53_s24 = sshll.u32 %s5190_s5, 4  ;;  %s54_s24 = int_to_ptr.hbm [resolvable:$true] %s53_s24 }
   0x8   :  { %31 = dma.hbm_to_vmem [thread:$0]  %s24_s16, 8192, %s26_s20, [#allocation3], %s4980_s21, %s4980_s21, %s4981_s22  }
   0x9   :  { %s4982_s25 = smov [#allocation6]   ;;  %s68_s28 = sshll.u32 %s5192_s7, 4  ;;  %s69_s28 = int_to_ptr.hbm [resolvable:$true] %s68_s28 }
   0xa   :  { %s55_s26 = sshll.u32 %s4982_s25, 4  ;;  %s4983_s29 = smov 64   ;;  %s56_s26 = int_to_ptr.vmem [resolvable:$true] %s55_s26 }
   0xb   :  { %s4984_s30 = smov 4   ;;  %s4985_s10 = smov [#allocation7]  }
   0xc   :  { %61 = dma.hbm_to_vmem [thread:$0]  %s54_s24, 4096, %s56_s26, [#allocation5], %s4983_s29, %s4983_s29, %s4984_s30  }
   0xd   :  { %s70_s11 = sshll.u32 %s4985_s10, 4  ;;  %s71_s11 = int_to_ptr.vmem [resolvable:$true] %s70_s11 }
   0xe   :  { %76 = dma.hbm_to_vmem [thread:$0]  %s69_s28, 1024, %s71_s11, [#allocation8], %s4983_s29, %s4983_s29, %s4984_s30  }
   0xf   :  { %4970 = dma.done.wait [#allocation3], 8192  }
  0x10   :  { %4971 = vsyncadd [#allocation3], 4294959104 }
  0x11   :  { %4972 = dma.done.wait [#allocation5], 36864  }
  0x12   :  { %4973 = vsyncadd [#allocation5], 4294930432 }
  0x13   :  { %4974 = dma.done.wait [#allocation8], 1024  }
  0x14   :  { %4975 = vsyncadd [#allocation8], 4294966272  ;;  %v3287_v0 = vld [vmem:[#allocation2 + $0x1c0] sm:$0xf]  ;;  %v4558_v2 = vld [vmem:[#allocation2 + $0x1c4] sm:$0xf] }
  0x15   :  { %v4562_v1 = vld [vmem:[#allocation2 + $0x1dc] sm:$0xf0]  ;;  %v3289_v4 = vld [vmem:[#allocation2 + $0x1e0] sm:$0xf0]  ;;  %v3295_v5 = vld [vmem:[#allocation2 + $0x1c8] sm:$0xf] }
  0x16   :  { %v3288_v3 = vor.u32 %v4562_v1, %v3287_v0  ;;  %v4563_v6 = vld [vmem:[#allocation2 + $0x1e4] sm:$0xf0]  ;;  %v3292_v7 = vor.u32 %v4558_v2, %v3289_v4  ;;  %v4559_v9 = vld [vmem:[#allocation2 + $0x1cc] sm:$0xf]  ;;  %v3255_v11 = vld [vmem:[#allocation2 + $0x180] sm:$0xf] }
  0x17   :  { %v3296_v8 = vor.u32 %v4563_v6, %v3295_v5  ;;  %v3297_v10 = vld [vmem:[#allocation2 + $0x1e8] sm:$0xf0]  ;;  %v4554_v13 = vld [vmem:[#allocation2 + $0x19c] sm:$0xf0]  ;;  %v4550_v14 = vld [vmem:[#allocation2 + $0x184] sm:$0xf] }
  0x18   :  { %505 = vmatpush.bf16.msra.mxu0 %v3288_v3  ;;  %v3300_v12 = vor.u32 %v4559_v9, %v3297_v10  ;;  %v3257_v15 = vld [vmem:[#allocation2 + $0x1a0] sm:$0xf0]  ;;  %519 = vmatpush.bf16.msra.mxu1 %v3292_v7  ;;  %v3256_v16 = vor.u32 %v4554_v13, %v3255_v11  ;;  %v3263_v18 = vld [vmem:[#allocation2 + $0x188] sm:$0xf]  ;;  %v4551_v20 = vld [vmem:[#allocation2 + $0x18c] sm:$0xf] }
  0x19   :  { %533 = vmatpush.bf16.msra.mxu2 %v3296_v8  ;;  %v3260_v17 = vor.u32 %v4550_v14, %v3257_v15  ;;  %v4555_v19 = vld [vmem:[#allocation2 + $0x1a4] sm:$0xf0]  ;;  %v3265_v22 = vld [vmem:[#allocation2 + $0x1a8] sm:$0xf0]  ;;  %v3223_v23 = vld [vmem:[#allocation2 + $0x140] sm:$0xf] }
  0x1a   :  { %547 = vmatpush.bf16.msra.mxu3 %v3300_v12  ;;  %v3264_v21 = vor.u32 %v4555_v19, %v3263_v18  ;;  %v4546_v24 = vld [vmem:[#allocation2 + $0x15c] sm:$0xf0]  ;;  %v3268_v25 = vor.u32 %v4551_v20, %v3265_v22  ;;  %v4542_v26 = vld [vmem:[#allocation2 + $0x144] sm:$0xf]  ;;  %v3231_v28 = vld [vmem:[#allocation2 + $0x148] sm:$0xf] }
  0x1b   :  { %v3225_v27 = vld [vmem:[#allocation2 + $0x160] sm:$0xf0]  ;;  %v3224_v29 = vor.u32 %v4546_v24, %v3223_v23  ;;  %v4547_v30 = vld [vmem:[#allocation2 + $0x164] sm:$0xf0]  ;;  %v4543_v31 = vld [vmem:[#allocation2 + $0x14c] sm:$0xf] }
  0x1c   :  { %506 = vmatpush.bf16.msra.mxu0 %v3256_v16  ;;  %v3233_v32 = vld [vmem:[#allocation2 + $0x168] sm:$0xf0]  ;;  %520 = vmatpush.bf16.msra.mxu1 %v3260_v17  ;;  %v3228_v33 = vor.u32 %v4542_v26, %v3225_v27  ;;  %v3232_v34 = vor.u32 %v4547_v30, %v3231_v28  ;;  %v3191_v35 = vld [vmem:[#allocation2 + $0x100] sm:$0xf]  ;;  %v4534_v37 = vld [vmem:[#allocation2 + $0x104] sm:$0xf] }
  0x1d   :  { %534 = vmatpush.bf16.msra.mxu2 %v3264_v21  ;;  %v4538_v36 = vld [vmem:[#allocation2 + $0x11c] sm:$0xf0]  ;;  %v3236_v38 = vor.u32 %v4543_v31, %v3233_v32  ;;  %v3193_v39 = vld [vmem:[#allocation2 + $0x120] sm:$0xf0]  ;;  %v3199_v40 = vld [vmem:[#allocation2 + $0x108] sm:$0xf] }
  0x1e   :  { %548 = vmatpush.bf16.msra.mxu3 %v3268_v25  ;;  %v4539_v41 = vld [vmem:[#allocation2 + $0x124] sm:$0xf0]  ;;  %v4535_v42 = vld [vmem:[#allocation2 + $0x10c] sm:$0xf]  ;;  %v3192_v44 = vor.u32 %v4538_v36, %v3191_v35  ;;  %v3196_v45 = vor.u32 %v4534_v37, %v3193_v39  ;;  %v3159_v47 = vld [vmem:[#allocation2 + $0xc0] sm:$0xf] }
  0x1f   :  { %v3201_v43 = vld [vmem:[#allocation2 + $0x128] sm:$0xf0]  ;;  %v3200_v46 = vor.u32 %v4539_v41, %v3199_v40  ;;  %v4530_v48 = vld [vmem:[#allocation2 + $0xdc] sm:$0xf0]  ;;  %v4526_v49 = vld [vmem:[#allocation2 + $0xc4] sm:$0xf] }
  0x20   :  { %507 = vmatpush.bf16.msra.mxu0 %v3224_v29  ;;  %521 = vmatpush.bf16.msra.mxu1 %v3228_v33  ;;  %v3204_v50 = vor.u32 %v4535_v42, %v3201_v43  ;;  %v3161_v51 = vld [vmem:[#allocation2 + $0xe0] sm:$0xf0]  ;;  %v3167_v52 = vld [vmem:[#allocation2 + $0xc8] sm:$0xf]  ;;  %v4527_v54 = vld [vmem:[#allocation2 + $0xcc] sm:$0xf]  ;;  %v3160_v56 = vor.u32 %v4530_v48, %v3159_v47 }
  0x21   :  { %535 = vmatpush.bf16.msra.mxu2 %v3232_v34  ;;  %v4531_v53 = vld [vmem:[#allocation2 + $0xe4] sm:$0xf0]  ;;  %v3169_v55 = vld [vmem:[#allocation2 + $0xe8] sm:$0xf0]  ;;  %v3164_v57 = vor.u32 %v4526_v49, %v3161_v51  ;;  %v3127_v59 = vld [vmem:[#allocation2 + $0x80] sm:$0xf] }
  0x22   :  { %549 = vmatpush.bf16.msra.mxu3 %v3236_v38  ;;  %v3168_v58 = vor.u32 %v4531_v53, %v3167_v52  ;;  %v4522_v60 = vld [vmem:[#allocation2 + $0x9c] sm:$0xf0]  ;;  %v4518_v61 = vld [vmem:[#allocation2 + $0x84] sm:$0xf]  ;;  %v3172_v62 = vor.u32 %v4527_v54, %v3169_v55  ;;  %v3135_v0 = vld [vmem:[#allocation2 + $0x88] sm:$0xf] }
  0x23   :  { %v3129_v63 = vld [vmem:[#allocation2 + $0xa0] sm:$0xf0]  ;;  %v4523_v1 = vld [vmem:[#allocation2 + $0xa4] sm:$0xf0]  ;;  %v4519_v2 = vld [vmem:[#allocation2 + $0x8c] sm:$0xf]  ;;  %v3128_v4 = vor.u32 %v4522_v60, %v3127_v59 }
  0x24   :  { %508 = vmatpush.bf16.msra.mxu0 %v3192_v44  ;;  %522 = vmatpush.bf16.msra.mxu1 %v3196_v45  ;;  %v3137_v3 = vld [vmem:[#allocation2 + $0xa8] sm:$0xf0]  ;;  %v3132_v5 = vor.u32 %v4518_v61, %v3129_v63  ;;  %v3136_v6 = vor.u32 %v4523_v1, %v3135_v0  ;;  %v3095_v7 = vld [vmem:[#allocation2 + $0x40] sm:$0xf]  ;;  %v4510_v9 = vld [vmem:[#allocation2 + $0x44] sm:$0xf] }
  0x25   :  { %536 = vmatpush.bf16.msra.mxu2 %v3200_v46  ;;  %v4514_v8 = vld [vmem:[#allocation2 + $0x5c] sm:$0xf0]  ;;  %v3140_v10 = vor.u32 %v4519_v2, %v3137_v3  ;;  %v3097_v11 = vld [vmem:[#allocation2 + $0x60] sm:$0xf0]  ;;  %v3103_v12 = vld [vmem:[#allocation2 + $0x48] sm:$0xf] }
  0x26   :  { %550 = vmatpush.bf16.msra.mxu3 %v3204_v50  ;;  %v4515_v13 = vld [vmem:[#allocation2 + $0x64] sm:$0xf0]  ;;  %v4511_v14 = vld [vmem:[#allocation2 + $0x4c] sm:$0xf]  ;;  %v3096_v16 = vor.u32 %v4514_v8, %v3095_v7  ;;  %v3063_v17 = vld [vmem:[#allocation2] sm:$0xf]  ;;  %v3100_v19 = vor.u32 %v4510_v9, %v3097_v11 }
  0x27   :  { %v3105_v15 = vld [vmem:[#allocation2 + $0x68] sm:$0xf0]  ;;  %v4506_v18 = vld [vmem:[#allocation2 + $0x1c] sm:$0xf0]  ;;  %v3104_v20 = vor.u32 %v4515_v13, %v3103_v12  ;;  %v4502_v21 = vld [vmem:[#allocation2 + $0x4] sm:$0xf] }
  0x28   :  { %509 = vmatpush.bf16.msra.mxu0 %v3160_v56  ;;  %523 = vmatpush.bf16.msra.mxu1 %v3164_v57  ;;  %v3065_v22 = vld [vmem:[#allocation2 + $0x20] sm:$0xf0]  ;;  %v3071_v23 = vld [vmem:[#allocation2 + $0x8] sm:$0xf]  ;;  %v3108_v24 = vor.u32 %v4511_v14, %v3105_v15  ;;  %v4503_v26 = vld [vmem:[#allocation2 + $0xc] sm:$0xf]  ;;  %v3064_v31 = vor.u32 %v4506_v18, %v3063_v17 }
  0x29   :  { %537 = vmatpush.bf16.msra.mxu2 %v3168_v58  ;;  %v4507_v25 = vld [vmem:[#allocation2 + $0x24] sm:$0xf0]  ;;  %v3073_v27 = vld [vmem:[#allocation2 + $0x28] sm:$0xf0]  ;;  %v3303_v28 = vld [vmem:[#allocation2 + $0x1d0] sm:$0xf]  ;;  %v3068_v35 = vor.u32 %v4502_v21, %v3065_v22 }
  0x2a   :  { %551 = vmatpush.bf16.msra.mxu3 %v3172_v62  ;;  %v4564_v29 = vld [vmem:[#allocation2 + $0x1ec] sm:$0xf0]  ;;  %v4560_v30 = vld [vmem:[#allocation2 + $0x1d4] sm:$0xf]  ;;  %v3311_v33 = vld [vmem:[#allocation2 + $0x1d8] sm:$0xf]  ;;  %v3072_v36 = vor.u32 %v4507_v25, %v3071_v23  ;;  %v3076_v39 = vor.u32 %v4503_v26, %v3073_v27 }
  0x2b   :  { %v3305_v32 = vld [vmem:[#allocation2 + $0x1f0] sm:$0xf0]  ;;  %v4565_v34 = vld [vmem:[#allocation2 + $0x1f4] sm:$0xf0]  ;;  %v4561_v37 = vld [vmem:[#allocation2 + $0x1dc] sm:$0xf]  ;;  %v3304_v40 = vor.u32 %v4564_v29, %v3303_v28 }
  0x2c   :  { %510 = vmatpush.bf16.msra.mxu0 %v3128_v4  ;;  %524 = vmatpush.bf16.msra.mxu1 %v3132_v5  ;;  %v3313_v38 = vld [vmem:[#allocation2 + $0x1f8] sm:$0xf0]  ;;  %v5051_v41 = vld [vmem:[%s5185_s0] sm:$0xff]  ;;  %v3308_v42 = vor.u32 %v4560_v30, %v3305_v32  ;;  %v3312_v43 = vor.u32 %v4565_v34, %v3311_v33  ;;  %v3271_v44 = vld [vmem:[#allocation2 + $0x190] sm:$0xf] }
  0x2d   :  { %538 = vmatpush.bf16.msra.mxu2 %v3136_v6  ;;  %v4556_v45 = vld [vmem:[#allocation2 + $0x1ac] sm:$0xf0]  ;;  %v4552_v46 = vld [vmem:[#allocation2 + $0x194] sm:$0xf]  ;;  %v3316_v47 = vor.u32 %v4561_v37, %v3313_v38  ;;  %v3279_v49 = vld [vmem:[#allocation2 + $0x198] sm:$0xf] }
  0x2e   :  { %552 = vmatpush.bf16.msra.mxu3 %v3140_v10  ;;  %v3273_v48 = vld [vmem:[#allocation2 + $0x1b0] sm:$0xf0]  ;;  %v4557_v50 = vld [vmem:[#allocation2 + $0x1b4] sm:$0xf0]  ;;  %v4553_v51 = vld [vmem:[#allocation2 + $0x19c] sm:$0xf]  ;;  %v3272_v53 = vor.u32 %v4556_v45, %v3271_v44 }
  0x2f   :  { %v3281_v52 = vld [vmem:[#allocation2 + $0x1b8] sm:$0xf0]  ;;  %v3276_v54 = vor.u32 %v4552_v46, %v3273_v48  ;;  %v3280_v55 = vor.u32 %v4557_v50, %v3279_v49  ;;  %v3239_v56 = vld [vmem:[#allocation2 + $0x150] sm:$0xf]  ;;  %v4544_v58 = vld [vmem:[#allocation2 + $0x154] sm:$0xf] }
  0x30   :  { %511 = vmatpush.bf16.msra.mxu0 %v3096_v16  ;;  %525 = vmatpush.bf16.msra.mxu1 %v3100_v19  ;;  %v4548_v57 = vld [vmem:[#allocation2 + $0x16c] sm:$0xf0]  ;;  %v3284_v59 = vor.u32 %v4553_v51, %v3281_v52  ;;  %v3241_v60 = vld [vmem:[#allocation2 + $0x170] sm:$0xf0]  ;;  %v3247_v61 = vld [vmem:[#allocation2 + $0x158] sm:$0xf] }
  0x31   :  { %539 = vmatpush.bf16.msra.mxu2 %v3104_v20  ;;  %v4549_v62 = vld [vmem:[#allocation2 + $0x174] sm:$0xf0]  ;;  %v4545_v63 = vld [vmem:[#allocation2 + $0x15c] sm:$0xf]  ;;  %v3240_v1 = vor.u32 %v4548_v57, %v3239_v56  ;;  %v3244_v2 = vor.u32 %v4544_v58, %v3241_v60  ;;  %v3207_v4 = vld [vmem:[#allocation2 + $0x110] sm:$0xf] }
  0x32   :  { %553 = vmatpush.bf16.msra.mxu3 %v3108_v24  ;;  %v3249_v0 = vld [vmem:[#allocation2 + $0x178] sm:$0xf0]  ;;  %v3248_v3 = vor.u32 %v4549_v62, %v3247_v61  ;;  %v4540_v5 = vld [vmem:[#allocation2 + $0x12c] sm:$0xf0]  ;;  %v4536_v6 = vld [vmem:[#allocation2 + $0x114] sm:$0xf] }
  0x33   :  { %v3252_v7 = vor.u32 %v4545_v63, %v3249_v0  ;;  %v3209_v8 = vld [vmem:[#allocation2 + $0x130] sm:$0xf0]  ;;  %v3215_v9 = vld [vmem:[#allocation2 + $0x118] sm:$0xf]  ;;  %v4537_v11 = vld [vmem:[#allocation2 + $0x11c] sm:$0xf]  ;;  %v3208_v13 = vor.u32 %v4540_v5, %v3207_v4 }
  0x34   :  { %512 = vmatpush.bf16.msra.mxu0 %v3064_v31  ;;  %526 = vmatpush.bf16.msra.mxu1 %v3068_v35  ;;  %v4541_v10 = vld [vmem:[#allocation2 + $0x134] sm:$0xf0]  ;;  %v3217_v12 = vld [vmem:[#allocation2 + $0x138] sm:$0xf0]  ;;  %v3212_v14 = vor.u32 %v4536_v6, %v3209_v8  ;;  %v3175_v16 = vld [vmem:[#allocation2 + $0xd0] sm:$0xf] }
  0x35   :  { %540 = vmatpush.bf16.msra.mxu2 %v3072_v36  ;;  %v3216_v15 = vor.u32 %v4541_v10, %v3215_v9  ;;  %v4532_v17 = vld [vmem:[#allocation2 + $0xec] sm:$0xf0]  ;;  %v4528_v18 = vld [vmem:[#allocation2 + $0xd4] sm:$0xf]  ;;  %v3220_v19 = vor.u32 %v4537_v11, %v3217_v12  ;;  %v3183_v21 = vld [vmem:[#allocation2 + $0xd8] sm:$0xf] }
  0x36   :  { %554 = vmatpush.bf16.msra.mxu3 %v3076_v39  ;;  %v3177_v20 = vld [vmem:[#allocation2 + $0xf0] sm:$0xf0]  ;;  %v4533_v22 = vld [vmem:[#allocation2 + $0xf4] sm:$0xf0]  ;;  %v4529_v23 = vld [vmem:[#allocation2 + $0xdc] sm:$0xf]  ;;  %v3176_v25 = vor.u32 %v4532_v17, %v3175_v16 }
  0x37   :  { %513 = vmatmul.bf16.vlgmr.msra.gmra.mxu0 %v5051_v41  ;;  %527 = vmatmul.bf16.vlgmr.msra.gmra.mxu1 %v5051_v41  ;;  %v3185_v24 = vld [vmem:[#allocation2 + $0xf8] sm:$0xf0]  ;;  %v3180_v26 = vor.u32 %v4528_v18, %v3177_v20  ;;  %v3184_v27 = vor.u32 %v4533_v22, %v3183_v21  ;;  %v3143_v28 = vld [vmem:[#allocation2 + $0x90] sm:$0xf]  ;;  %v4520_v30 = vld [vmem:[#allocation2 + $0x94] sm:$0xf] }
  0x38   :  { %561 = vmatpush.bf16.msrb.mxu0 %v3304_v40  ;;  %575 = vmatpush.bf16.msrb.mxu1 %v3308_v42  ;;  %v4524_v29 = vld [vmem:[#allocation2 + $0xac] sm:$0xf0]  ;;  %v3188_v31 = vor.u32 %v4529_v23, %v3185_v24  ;;  %v3145_v32 = vld [vmem:[#allocation2 + $0xb0] sm:$0xf0]  ;;  %v3151_v33 = vld [vmem:[#allocation2 + $0x98] sm:$0xf] }
  0x39   :  { %589 = vmatpush.bf16.msrb.mxu2 %v3312_v43  ;;  %555 = vmatmul.bf16.vlgmr.msra.gmra.mxu3 %v5051_v41  ;;  %v4525_v34 = vld [vmem:[#allocation2 + $0xb4] sm:$0xf0]  ;;  %v4521_v35 = vld [vmem:[#allocation2 + $0x9c] sm:$0xf]  ;;  %v3144_v37 = vor.u32 %v4524_v29, %v3143_v28  ;;  %v3148_v38 = vor.u32 %v4520_v30, %v3145_v32  ;;  %v3111_v40 = vld [vmem:[#allocation2 + $0x50] sm:$0xf] }
  0x3a   :  { %603 = vmatpush.bf16.msrb.mxu3 %v3316_v47  ;;  %541 = vmatmul.bf16.vlgmr.msra.gmra.mxu2 %v5051_v41  ;;  %v3153_v36 = vld [vmem:[#allocation2 + $0xb8] sm:$0xf0]  ;;  %v3152_v39 = vor.u32 %v4525_v34, %v3151_v33  ;;  %v4516_v42 = vld [vmem:[#allocation2 + $0x6c] sm:$0xf0]  ;;  %v4512_v43 = vld [vmem:[#allocation2 + $0x54] sm:$0xf] }
  0x3b   :  { %v3156_v44 = vor.u32 %v4521_v35, %v3153_v36  ;;  %v3113_v45 = vld [vmem:[#allocation2 + $0x70] sm:$0xf0]  ;;  %v3119_v46 = vld [vmem:[#allocation2 + $0x58] sm:$0xf]  ;;  %v4513_v48 = vld [vmem:[#allocation2 + $0x5c] sm:$0xf]  ;;  %v3112_v50 = vor.u32 %v4516_v42, %v3111_v40 }
  0x3c   :  { %562 = vmatpush.bf16.msrb.mxu0 %v3272_v53  ;;  %576 = vmatpush.bf16.msrb.mxu1 %v3276_v54  ;;  %v4517_v47 = vld [vmem:[#allocation2 + $0x74] sm:$0xf0]  ;;  %v3121_v49 = vld [vmem:[#allocation2 + $0x78] sm:$0xf0]  ;;  %v3079_v51 = vld [vmem:[#allocation2 + $0x10] sm:$0xf]  ;;  %v3116_v52 = vor.u32 %v4512_v43, %v3113_v45 }
  0x3d   :  { %590 = vmatpush.bf16.msrb.mxu2 %v3280_v55  ;;  %v3120_v53 = vor.u32 %v4517_v47, %v3119_v46  ;;  %v4508_v54 = vld [vmem:[#allocation2 + $0x2c] sm:$0xf0]  ;;  %v4504_v55 = vld [vmem:[#allocation2 + $0x14] sm:$0xf]  ;;  %v3124_v57 = vor.u32 %v4513_v48, %v3121_v49  ;;  %v3087_v58 = vld [vmem:[#allocation2 + $0x18] sm:$0xf] }
  0x3e   :  { %604 = vmatpush.bf16.msrb.mxu3 %v3284_v59  ;;  %v3081_v56 = vld [vmem:[#allocation2 + $0x30] sm:$0xf0]  ;;  %v4509_v59 = vld [vmem:[#allocation2 + $0x34] sm:$0xf0]  ;;  %v4505_v60 = vld [vmem:[#allocation2 + $0x1c] sm:$0xf]  ;;  %v3080_v0 = vor.u32 %v4508_v54, %v3079_v51 }
  0x3f   :  { %v3089_v61 = vld [vmem:[#allocation2 + $0x38] sm:$0xf0]  ;;  %v3431_v62 = vld [vmem:[#allocation4 + $0xe0] sm:$0xf]  ;;  %v4596_v63 = vld [vmem:[#allocation4 + $0xec] sm:$0xf0]  ;;  %v3088_v4 = vor.u32 %v4509_v59, %v3087_v58 }
  0x40   :  { %563 = vmatpush.bf16.msrb.mxu0 %v3240_v1  ;;  %577 = vmatpush.bf16.msrb.mxu1 %v3244_v2  ;;  %v3559_v1 = vld [vmem:[#allocation4 + $0x1e0] sm:$0xf]  ;;  %v4628_v2 = vld [vmem:[#allocation4 + $0x1ec] sm:$0xf0]  ;;  %v3092_v5 = vor.u32 %v4505_v60, %v3089_v61  ;;  %v3432_v6 = vor.u32 %v4596_v63, %v3431_v62 }
  0x41   :  { %591 = vmatpush.bf16.msrb.mxu2 %v3248_v3  ;;  %v3084_v3 = vor.u32 %v4504_v55, %v3081_v56  ;;  %v3687_v8 = vld [vmem:[#allocation4 + $0x2e0] sm:$0xf]  ;;  %v4660_v9 = vld [vmem:[#allocation4 + $0x2ec] sm:$0xf0]  ;;  %v3560_v10 = vor.u32 %v4628_v2, %v3559_v1 }
  0x42   :  { %605 = vmatpush.bf16.msrb.mxu3 %v3252_v7  ;;  %v3415_v7 = vld [vmem:[#allocation4 + $0xc0] sm:$0xf]  ;;  %v4592_v11 = vld [vmem:[#allocation4 + $0xcc] sm:$0xf0]  ;;  %v3688_v16 = vor.u32 %v4660_v9, %v3687_v8 }
  0x43   :  { %v3815_v12 = vld [vmem:[#allocation4 + $0x3e0] sm:$0xf]  ;;  %v3416_v17 = vor.u32 %v4592_v11, %v3415_v7  ;;  %v4656_v21 = vld [vmem:[#allocation4 + $0x2cc] sm:$0xf0] }
  0x44   :  { %564 = vmatpush.bf16.msrb.mxu0 %v3208_v13  ;;  %578 = vmatpush.bf16.msrb.mxu1 %v3212_v14  ;;  %v4692_v13 = vld [vmem:[#allocation4 + $0x3ec] sm:$0xf0]  ;;  %v3543_v14 = vld [vmem:[#allocation4 + $0x1c0] sm:$0xf] }
  0x45   :  { %592 = vmatpush.bf16.msrb.mxu2 %v3216_v15  ;;  %v4624_v15 = vld [vmem:[#allocation4 + $0x1cc] sm:$0xf0]  ;;  %v3816_v18 = vor.u32 %v4692_v13, %v3815_v12  ;;  %v3671_v20 = vld [vmem:[#allocation4 + $0x2c0] sm:$0xf] }
  0x46   :  { %606 = vmatpush.bf16.msrb.mxu3 %v3220_v19  ;;  %v3399_v19 = vld [vmem:[#allocation4 + $0xa0] sm:$0xf]  ;;  %v3544_v22 = vor.u32 %v4624_v15, %v3543_v14  ;;  %v4588_v23 = vld [vmem:[#allocation4 + $0xac] sm:$0xf0]  ;;  %v3672_v28 = vor.u32 %v4656_v21, %v3671_v20 }
  0x47   :  { %v3799_v24 = vld [vmem:[#allocation4 + $0x3c0] sm:$0xf]  ;;  %v3400_v29 = vor.u32 %v4588_v23, %v3399_v19  ;;  %v4652_v33 = vld [vmem:[#allocation4 + $0x2ac] sm:$0xf0] }
  0x48   :  { %565 = vmatpush.bf16.msrb.mxu0 %v3176_v25  ;;  %579 = vmatpush.bf16.msrb.mxu1 %v3180_v26  ;;  %v4688_v25 = vld [vmem:[#allocation4 + $0x3cc] sm:$0xf0]  ;;  %v3527_v26 = vld [vmem:[#allocation4 + $0x1a0] sm:$0xf] }
  0x49   :  { %593 = vmatpush.bf16.msrb.mxu2 %v3184_v27  ;;  %v4620_v27 = vld [vmem:[#allocation4 + $0x1ac] sm:$0xf0]  ;;  %v3800_v30 = vor.u32 %v4688_v25, %v3799_v24  ;;  %v3655_v32 = vld [vmem:[#allocation4 + $0x2a0] sm:$0xf] }
  0x4a   :  { %607 = vmatpush.bf16.msrb.mxu3 %v3188_v31  ;;  %v3383_v31 = vld [vmem:[#allocation4 + $0x80] sm:$0xf]  ;;  %v3528_v34 = vor.u32 %v4620_v27, %v3527_v26  ;;  %v4584_v35 = vld [vmem:[#allocation4 + $0x8c] sm:$0xf0]  ;;  %v3656_v40 = vor.u32 %v4652_v33, %v3655_v32 }
  0x4b   :  { %v3783_v36 = vld [vmem:[#allocation4 + $0x3a0] sm:$0xf]  ;;  %v3384_v43 = vor.u32 %v4584_v35, %v3383_v31  ;;  %v4648_v46 = vld [vmem:[#allocation4 + $0x28c] sm:$0xf0] }
  0x4c   :  { %566 = vmatpush.bf16.msrb.mxu0 %v3144_v37  ;;  %580 = vmatpush.bf16.msrb.mxu1 %v3148_v38  ;;  %v4684_v37 = vld [vmem:[#allocation4 + $0x3ac] sm:$0xf0]  ;;  %v3511_v38 = vld [vmem:[#allocation4 + $0x180] sm:$0xf] }
  0x4d   :  { %594 = vmatpush.bf16.msrb.mxu2 %v3152_v39  ;;  %v4616_v39 = vld [vmem:[#allocation4 + $0x18c] sm:$0xf0]  ;;  %v3367_v42 = vld [vmem:[#allocation4 + $0x60] sm:$0xf] }
  0x4e   :  { %608 = vmatpush.bf16.msrb.mxu3 %v3156_v44  ;;  %v3784_v44 = vor.u32 %v4684_v37, %v3783_v36  ;;  %v3639_v45 = vld [vmem:[#allocation4 + $0x280] sm:$0xf]  ;;  %v3512_v47 = vor.u32 %v4616_v39, %v3511_v38  ;;  %v4680_v49 = vld [vmem:[#allocation4 + $0x38c] sm:$0xf0] }
  0x4f   :  { %v3767_v48 = vld [vmem:[#allocation4 + $0x380] sm:$0xf]  ;;  %v4612_v51 = vld [vmem:[#allocation4 + $0x16c] sm:$0xf0] }
  0x50   :  { %567 = vmatpush.bf16.msrb.mxu0 %v3112_v50  ;;  %581 = vmatpush.bf16.msrb.mxu1 %v3116_v52  ;;  %v3495_v50 = vld [vmem:[#allocation4 + $0x160] sm:$0xf]  ;;  %v3640_v52 = vor.u32 %v4648_v46, %v3639_v45  ;;  %v3768_v54 = vor.u32 %v4680_v49, %v3767_v48  ;;  %v4576_v59 = vld [vmem:[#allocation4 + $0x4c] sm:$0xf0] }
  0x51   :  { %595 = vmatpush.bf16.msrb.mxu2 %v3120_v53  ;;  %v3351_v55 = vld [vmem:[#allocation4 + $0x40] sm:$0xf]  ;;  %v3496_v58 = vor.u32 %v4612_v51, %v3495_v50  ;;  %v4676_v61 = vld [vmem:[#allocation4 + $0x36c] sm:$0xf0] }
  0x52   :  { %609 = vmatpush.bf16.msrb.mxu3 %v3124_v57  ;;  %v3623_v56 = vld [vmem:[#allocation4 + $0x260] sm:$0xf]  ;;  %v4644_v57 = vld [vmem:[#allocation4 + $0x26c] sm:$0xf0]  ;;  %v3352_v1 = vor.u32 %v4576_v59, %v3351_v55 }
  0x53   :  { %v3751_v60 = vld [vmem:[#allocation4 + $0x360] sm:$0xf]  ;;  %v4608_v63 = vld [vmem:[#allocation4 + $0x14c] sm:$0xf0] }
  0x54   :  { %568 = vmatpush.bf16.msrb.mxu0 %v3080_v0  ;;  %582 = vmatpush.bf16.msrb.mxu1 %v3084_v3  ;;  %v3479_v62 = vld [vmem:[#allocation4 + $0x140] sm:$0xf]  ;;  %v3624_v0 = vor.u32 %v4644_v57, %v3623_v56  ;;  %v3752_v2 = vor.u32 %v4676_v61, %v3751_v60  ;;  %v4572_v7 = vld [vmem:[#allocation4 + $0x2c] sm:$0xf0] }
  0x55   :  { %596 = vmatpush.bf16.msrb.mxu2 %v3088_v4  ;;  %v3335_v3 = vld [vmem:[#allocation4 + $0x20] sm:$0xf]  ;;  %v4672_v9 = vld [vmem:[#allocation4 + $0x34c] sm:$0xf0] }
  0x56   :  { %610 = vmatpush.bf16.msrb.mxu3 %v3092_v5  ;;  %v3607_v4 = vld [vmem:[#allocation4 + $0x240] sm:$0xf]  ;;  %v4640_v5 = vld [vmem:[#allocation4 + $0x24c] sm:$0xf0]  ;;  %v3336_v14 = vor.u32 %v4572_v7, %v3335_v3 }
  0x57   :  { %569 = vmatmul.bf16.vlgmr.msrb.gmra.mxu0 %v5051_v41  ;;  %583 = vmatmul.bf16.vlgmr.msrb.gmra.mxu1 %v5051_v41  ;;  %v3735_v8 = vld [vmem:[#allocation4 + $0x340] sm:$0xf]  ;;  %v4604_v11 = vld [vmem:[#allocation4 + $0x12c] sm:$0xf0]  ;;  %v3608_v12 = vor.u32 %v4640_v5, %v3607_v4 }
  0x58   :  { %2187 = vmatpush.bf16.msra.mxu0 %v3432_v6  ;;  %2201 = vmatpush.bf16.msra.mxu1 %v3560_v10  ;;  %v3480_v6 = vor.u32 %v4608_v63, %v3479_v62  ;;  %v3463_v10 = vld [vmem:[#allocation4 + $0x120] sm:$0xf]  ;;  %v3736_v15 = vor.u32 %v4672_v9, %v3735_v8  ;;  %v4600_v23 = vld [vmem:[#allocation4 + $0x10c] sm:$0xf0] }
  0x59   :  { %597 = vmatmul.bf16.vlgmr.msrb.gmra.mxu2 %v5051_v41  ;;  %611 = vmatmul.bf16.vlgmr.msrb.gmra.mxu3 %v5051_v41  ;;  %v4580_v41 = vld [vmem:[#allocation4 + $0x6c] sm:$0xf0]  ;;  %v3319_v13 = vld [vmem:[#allocation4] sm:$0xf]  ;;  %v3464_v19 = vor.u32 %v4604_v11, %v3463_v10 }
  0x5a   :  { %2215 = vmatpush.bf16.msra.mxu2 %v3688_v16  ;;  %2229 = vmatpush.bf16.msra.mxu3 %v3816_v18  ;;  %v3368_v53 = vor.u32 %v4580_v41, %v3367_v42  ;;  %v4568_v16 = vld [vmem:[#allocation4 + $0xc] sm:$0xf0]  ;;  %v3447_v20 = vld [vmem:[#allocation4 + $0x100] sm:$0xf] }
  0x5b   :  { %v4636_v18 = vld [vmem:[#allocation4 + $0x22c] sm:$0xf0]  ;;  %v3719_v21 = vld [vmem:[#allocation4 + $0x320] sm:$0xf]  ;;  %v3448_v35 = vor.u32 %v4600_v23, %v3447_v20 }
  0x5c   :  { %2188 = vmatpush.bf16.msra.mxu0 %v3416_v17  ;;  %2202 = vmatpush.bf16.msra.mxu1 %v3544_v22  ;;  %v3591_v17 = vld [vmem:[#allocation4 + $0x220] sm:$0xf]  ;;  %v4668_v22 = vld [vmem:[#allocation4 + $0x32c] sm:$0xf0] }
  0x5d   :  { %v3943_v24 = vld [vmem:[#allocation4 + $0x4e0] sm:$0xf]  ;;  %v4724_v25 = vld [vmem:[#allocation4 + $0x4ec] sm:$0xf0] }
  0x5e   :  { %2216 = vmatpush.bf16.msra.mxu2 %v3672_v28  ;;  %2230 = vmatpush.bf16.msra.mxu3 %v3800_v30  ;;  %v4071_v26 = vld [vmem:[#allocation4 + $0x5e0] sm:$0xf]  ;;  %v4756_v27 = vld [vmem:[#allocation4 + $0x5ec] sm:$0xf0]  ;;  %v3592_v28 = vor.u32 %v4636_v18, %v3591_v17  ;;  %v3720_v30 = vor.u32 %v4668_v22, %v3719_v21  ;;  %v3944_v36 = vor.u32 %v4724_v25, %v3943_v24 }
  0x5f   :  { %v3927_v31 = vld [vmem:[#allocation4 + $0x4c0] sm:$0xf]  ;;  %v4632_v33 = vld [vmem:[#allocation4 + $0x20c] sm:$0xf0] }
  0x60   :  { %2189 = vmatpush.bf16.msra.mxu0 %v3400_v29  ;;  %2203 = vmatpush.bf16.msra.mxu1 %v3528_v34  ;;  %v3320_v29 = vor.u32 %v4568_v16, %v3319_v13  ;;  %v3575_v32 = vld [vmem:[#allocation4 + $0x200] sm:$0xf]  ;;  %v4664_v37 = vld [vmem:[#allocation4 + $0x30c] sm:$0xf0] }
  0x61   :  { %v3703_v34 = vld [vmem:[#allocation4 + $0x300] sm:$0xf]  ;;  %v4788_v39 = vld [vmem:[#allocation4 + $0x6ec] sm:$0xf0]  ;;  %v3576_v46 = vor.u32 %v4632_v33, %v3575_v32 }
  0x62   :  { %2217 = vmatpush.bf16.msra.mxu2 %v3656_v40  ;;  %2231 = vmatpush.bf16.msra.mxu3 %v3784_v44  ;;  %v4199_v38 = vld [vmem:[#allocation4 + $0x6e0] sm:$0xf]  ;;  %v4072_v40 = vor.u32 %v4756_v27, %v4071_v26  ;;  %v4720_v42 = vld [vmem:[#allocation4 + $0x4cc] sm:$0xf0] }
  0x63   :  { %v4327_v41 = vld [vmem:[#allocation4 + $0x7e0] sm:$0xf]  ;;  %v4752_v45 = vld [vmem:[#allocation4 + $0x5cc] sm:$0xf0]  ;;  %v4200_v48 = vor.u32 %v4788_v39, %v4199_v38  ;;  %v3928_v49 = vor.u32 %v4720_v42, %v3927_v31 }
  0x64   :  { %2190 = vmatpush.bf16.msra.mxu0 %v3384_v43  ;;  %2204 = vmatpush.bf16.msra.mxu1 %v3512_v47  ;;  %v4820_v43 = vld [vmem:[#allocation4 + $0x7ec] sm:$0xf0]  ;;  %v4055_v44 = vld [vmem:[#allocation4 + $0x5c0] sm:$0xf]  ;;  %v3704_v47 = vor.u32 %v4664_v37, %v3703_v34 }
  0x65   :  { %v4328_v50 = vor.u32 %v4820_v43, %v4327_v41  ;;  %v3911_v51 = vld [vmem:[#allocation4 + $0x4a0] sm:$0xf]  ;;  %v4716_v55 = vld [vmem:[#allocation4 + $0x4ac] sm:$0xf0] }
  0x66   :  { %2218 = vmatpush.bf16.msra.mxu2 %v3640_v52  ;;  %2232 = vmatpush.bf16.msra.mxu3 %v3768_v54  ;;  %v4183_v52 = vld [vmem:[#allocation4 + $0x6c0] sm:$0xf]  ;;  %v4056_v54 = vor.u32 %v4752_v45, %v4055_v44  ;;  %v4816_v57 = vld [vmem:[#allocation4 + $0x7cc] sm:$0xf0]  ;;  %v3912_v61 = vor.u32 %v4716_v55, %v3911_v51 }
  0x67   :  { %v4311_v56 = vld [vmem:[#allocation4 + $0x7c0] sm:$0xf]  ;;  %v4748_v59 = vld [vmem:[#allocation4 + $0x5ac] sm:$0xf0] }
  0x68   :  { %2191 = vmatpush.bf16.msra.mxu0 %v3368_v53  ;;  %2205 = vmatpush.bf16.msra.mxu1 %v3496_v58  ;;  %v4784_v53 = vld [vmem:[#allocation4 + $0x6cc] sm:$0xf0]  ;;  %v4039_v58 = vld [vmem:[#allocation4 + $0x5a0] sm:$0xf]  ;;  %v4312_v62 = vor.u32 %v4816_v57, %v4311_v56 }
  0x69   :  { %v4184_v60 = vor.u32 %v4784_v53, %v4183_v52  ;;  %v4040_v63 = vor.u32 %v4748_v59, %v4039_v58  ;;  %v4744_v3 = vld [vmem:[#allocation4 + $0x58c] sm:$0xf0]  ;;  %v4295_v8 = vld [vmem:[#allocation4 + $0x7a0] sm:$0xf] }
  0x6a   :  { %2219 = vmatpush.bf16.msra.mxu2 %v3624_v0  ;;  %2233 = vmatpush.bf16.msra.mxu3 %v3752_v2  ;;  %v3895_v0 = vld [vmem:[#allocation4 + $0x480] sm:$0xf]  ;;  %v4780_v7 = vld [vmem:[#allocation4 + $0x6ac] sm:$0xf0] }
  0x6b   :  { %v4023_v2 = vld [vmem:[#allocation4 + $0x580] sm:$0xf]  ;;  %v4812_v10 = vld [vmem:[#allocation4 + $0x7ac] sm:$0xf0] }
  0x6c   :  { %2192 = vmatpush.bf16.msra.mxu0 %v3352_v1  ;;  %2206 = vmatpush.bf16.msra.mxu1 %v3480_v6  ;;  %v4712_v1 = vld [vmem:[#allocation4 + $0x48c] sm:$0xf0]  ;;  %v4024_v5 = vor.u32 %v4744_v3, %v4023_v2  ;;  %v4167_v6 = vld [vmem:[#allocation4 + $0x6a0] sm:$0xf]  ;;  %v4296_v11 = vor.u32 %v4812_v10, %v4295_v8 }
  0x6d   :  { %v3896_v4 = vor.u32 %v4712_v1, %v3895_v0  ;;  %v4168_v9 = vor.u32 %v4780_v7, %v4167_v6  ;;  %v4708_v13 = vld [vmem:[#allocation4 + $0x46c] sm:$0xf0]  ;;  %v4151_v18 = vld [vmem:[#allocation4 + $0x680] sm:$0xf] }
  0x6e   :  { %2220 = vmatpush.bf16.msra.mxu2 %v3608_v12  ;;  %2234 = vmatpush.bf16.msra.mxu3 %v3736_v15  ;;  %v3879_v12 = vld [vmem:[#allocation4 + $0x460] sm:$0xf]  ;;  %v4740_v16 = vld [vmem:[#allocation4 + $0x56c] sm:$0xf0] }
  0x6f   :  { %v3880_v15 = vor.u32 %v4708_v13, %v3879_v12  ;;  %v4279_v21 = vld [vmem:[#allocation4 + $0x780] sm:$0xf]  ;;  %v4808_v22 = vld [vmem:[#allocation4 + $0x78c] sm:$0xf0] }
  0x70   :  { %2193 = vmatpush.bf16.msra.mxu0 %v3336_v14  ;;  %2207 = vmatpush.bf16.msra.mxu1 %v3464_v19  ;;  %v4007_v14 = vld [vmem:[#allocation4 + $0x560] sm:$0xf]  ;;  %v4776_v19 = vld [vmem:[#allocation4 + $0x68c] sm:$0xf0]  ;;  %v4280_v23 = vor.u32 %v4808_v22, %v4279_v21  ;;  %v3561_v21 = vld [vmem:[#allocation4 + $0x1f0] sm:$0xf0] }
  0x71   :  { %v4008_v17 = vor.u32 %v4740_v16, %v4007_v14  ;;  %v4152_v20 = vor.u32 %v4776_v19, %v4151_v18  ;;  %v3863_v24 = vld [vmem:[#allocation4 + $0x440] sm:$0xf]  ;;  %v4704_v25 = vld [vmem:[#allocation4 + $0x44c] sm:$0xf0]  ;;  %v3433_v16 = vld [vmem:[#allocation4 + $0xf0] sm:$0xf0] }
  0x72   :  { %2221 = vmatpush.bf16.msra.mxu2 %v3592_v28  ;;  %2235 = vmatpush.bf16.msra.mxu3 %v3720_v30  ;;  %v3991_v26 = vld [vmem:[#allocation4 + $0x540] sm:$0xf]  ;;  %v3864_v27 = vor.u32 %v4704_v25, %v3863_v24  ;;  %v4736_v28 = vld [vmem:[#allocation4 + $0x54c] sm:$0xf0] }
  0x73   :  { %v4135_v30 = vld [vmem:[#allocation4 + $0x660] sm:$0xf]  ;;  %v4772_v31 = vld [vmem:[#allocation4 + $0x66c] sm:$0xf0] }
  0x74   :  { %2194 = vmatpush.bf16.msra.mxu0 %v3320_v29  ;;  %2208 = vmatpush.bf16.msra.mxu1 %v3448_v35  ;;  %v3992_v29 = vor.u32 %v4736_v28, %v3991_v26  ;;  %v4263_v32 = vld [vmem:[#allocation4 + $0x760] sm:$0xf]  ;;  %v4136_v33 = vor.u32 %v4772_v31, %v4135_v30  ;;  %v4804_v34 = vld [vmem:[#allocation4 + $0x76c] sm:$0xf0]  ;;  %v4590_v28 = vld [vmem:[#allocation4 + $0xc4] sm:$0xf] }
  0x75   :  { %v4264_v35 = vor.u32 %v4804_v34, %v4263_v32  ;;  %v4700_v37 = vld [vmem:[#allocation4 + $0x42c] sm:$0xf0]  ;;  %v3975_v39 = vld [vmem:[#allocation4 + $0x520] sm:$0xf]  ;;  %v4622_v32 = vld [vmem:[#allocation4 + $0x1c4] sm:$0xf] }
  0x76   :  { %2222 = vmatpush.bf16.msra.mxu2 %v3576_v46  ;;  %2236 = vmatpush.bf16.msra.mxu3 %v3704_v47  ;;  %v4119_v41 = vld [vmem:[#allocation4 + $0x640] sm:$0xf]  ;;  %v4768_v43 = vld [vmem:[#allocation4 + $0x64c] sm:$0xf0] }
  0x77   :  { %v4247_v44 = vld [vmem:[#allocation4 + $0x740] sm:$0xf]  ;;  %v4120_v45 = vor.u32 %v4768_v43, %v4119_v41  ;;  %v4800_v46 = vld [vmem:[#allocation4 + $0x74c] sm:$0xf0] }
  0x78   :  { %2243 = vmatpush.bf16.msrb.mxu0 %v3944_v36  ;;  %2257 = vmatpush.bf16.msrb.mxu1 %v4072_v40  ;;  %v3847_v36 = vld [vmem:[#allocation4 + $0x420] sm:$0xf]  ;;  %v4732_v40 = vld [vmem:[#allocation4 + $0x52c] sm:$0xf0]  ;;  %v4248_v47 = vor.u32 %v4800_v46, %v4247_v44  ;;  %v3817_v44 = vld [vmem:[#allocation4 + $0x3f0] sm:$0xf0] }
  0x79   :  { %v3848_v38 = vor.u32 %v4700_v37, %v3847_v36  ;;  %v3976_v42 = vor.u32 %v4732_v40, %v3975_v39  ;;  %v4728_v52 = vld [vmem:[#allocation4 + $0x50c] sm:$0xf0]  ;;  %v4231_v56 = vld [vmem:[#allocation4 + $0x720] sm:$0xf]  ;;  %v4658_v39 = vld [vmem:[#allocation4 + $0x2e4] sm:$0xf] }
  0x7a   :  { %2271 = vmatpush.bf16.msrb.mxu2 %v4200_v48  ;;  %2285 = vmatpush.bf16.msrb.mxu3 %v4328_v50  ;;  %v3831_v48 = vld [vmem:[#allocation4 + $0x400] sm:$0xf]  ;;  %v4764_v55 = vld [vmem:[#allocation4 + $0x62c] sm:$0xf0]  ;;  %v3689_v40 = vld [vmem:[#allocation4 + $0x2f0] sm:$0xf0] }
  0x7b   :  { %v3959_v50 = vld [vmem:[#allocation4 + $0x500] sm:$0xf]  ;;  %v4796_v57 = vld [vmem:[#allocation4 + $0x72c] sm:$0xf0]  ;;  %v3401_v46 = vld [vmem:[#allocation4 + $0xb0] sm:$0xf0] }
  0x7c   :  { %2244 = vmatpush.bf16.msrb.mxu0 %v3928_v49  ;;  %2258 = vmatpush.bf16.msrb.mxu1 %v4056_v54  ;;  %v4696_v49 = vld [vmem:[#allocation4 + $0x40c] sm:$0xf0]  ;;  %v3960_v53 = vor.u32 %v4728_v52, %v3959_v50  ;;  %v4103_v54 = vld [vmem:[#allocation4 + $0x620] sm:$0xf]  ;;  %v4232_v59 = vor.u32 %v4796_v57, %v4231_v56  ;;  %v3529_v50 = vld [vmem:[#allocation4 + $0x1b0] sm:$0xf0] }
  0x7d   :  { %v3832_v51 = vor.u32 %v4696_v49, %v3831_v48  ;;  %v4104_v58 = vor.u32 %v4764_v55, %v4103_v54  ;;  %v4792_v0 = vld [vmem:[#allocation4 + $0x70c] sm:$0xf0]  ;;  %v5064_v2 = vld [vmem:[%s5187_s2] sm:$0xff] }
  0x7e   :  { %2272 = vmatpush.bf16.msrb.mxu2 %v4184_v60  ;;  %2286 = vmatpush.bf16.msrb.mxu3 %v4312_v62  ;;  %v4087_v60 = vld [vmem:[#allocation4 + $0x600] sm:$0xf]  ;;  %v164_v6 = vperm.slane %v5064_v2, 1  ;;  %v165_v18 = vperm.slane %v5064_v2, 2  ;;  %v166_v22 = vperm.slane %v5064_v2, 3 }
  0x7f   :  { %v4618_v49 = vld [vmem:[#allocation4 + $0x1a4] sm:$0xf] }
  0x80   :  { %2245 = vmatpush.bf16.msrb.mxu0 %v3912_v61  ;;  %2259 = vmatpush.bf16.msrb.mxu1 %v4040_v63  ;;  %v4760_v61 = vld [vmem:[#allocation4 + $0x60c] sm:$0xf0]  ;;  %v4215_v63 = vld [vmem:[#allocation4 + $0x700] sm:$0xf]  ;;  %v4654_v57 = vld [vmem:[#allocation4 + $0x2c4] sm:$0xf] }
  0x81   :  { %v4088_v62 = vor.u32 %v4760_v61, %v4087_v60  ;;  %v4216_v1 = vor.u32 %v4792_v0, %v4215_v63  ;;  %v3532_v61 = vor.u32 %v4618_v49, %v3529_v50  ;;  %v4582_v63 = vld [vmem:[#allocation4 + $0x84] sm:$0xf]  ;;  %v3385_v0 = vld [vmem:[#allocation4 + $0x90] sm:$0xf0] }
  0x82   :  { %2273 = vmatpush.bf16.msrb.mxu2 %v4168_v9  ;;  %2287 = vmatpush.bf16.msrb.mxu3 %v4296_v11  ;;  %v4638_v49 = vld [vmem:[#allocation4 + $0x244] sm:$0xf]  ;;  %v3609_v50 = vld [vmem:[#allocation4 + $0x250] sm:$0xf0] }
  0x84   :  { %2246 = vmatpush.bf16.msrb.mxu0 %v3896_v4  ;;  %2260 = vmatpush.bf16.msrb.mxu1 %v4024_v5  ;;  %v163_v4 = vperm.slane %v5064_v2, 0 }
  0x86   :  { %2274 = vmatpush.bf16.msrb.mxu2 %v4152_v20  ;;  %2288 = vmatpush.bf16.msrb.mxu3 %v4280_v23  ;;  %v4626_v20 = vld [vmem:[#allocation4 + $0x1e4] sm:$0xf] }
  0x88   :  { %2247 = vmatpush.bf16.msrb.mxu0 %v3880_v15  ;;  %2261 = vmatpush.bf16.msrb.mxu1 %v4008_v17  ;;  %v4594_v15 = vld [vmem:[#allocation4 + $0xe4] sm:$0xf] }
  0x89   :  { %v3436_v25 = vor.u32 %v4594_v15, %v3433_v16  ;;  %v3497_v15 = vld [vmem:[#allocation4 + $0x170] sm:$0xf0] }
  0x8a   :  { %2275 = vmatpush.bf16.msrb.mxu2 %v4136_v33  ;;  %2289 = vmatpush.bf16.msrb.mxu3 %v4264_v35  ;;  %v3545_v33 = vld [vmem:[#allocation4 + $0x1d0] sm:$0xf0] }
  0x8b   :  { %v3548_v43 = vor.u32 %v4622_v32, %v3545_v33  ;;  %v3481_v32 = vld [vmem:[#allocation4 + $0x150] sm:$0xf0]  ;;  %v168_v33 = vperm.slane %v5064_v2, 5 }
  0x8c   :  { %2248 = vmatpush.bf16.msrb.mxu0 %v3864_v27  ;;  %2262 = vmatpush.bf16.msrb.mxu1 %v3992_v29  ;;  %v3564_v27 = vor.u32 %v4626_v20, %v3561_v21  ;;  %v3417_v29 = vld [vmem:[#allocation4 + $0xd0] sm:$0xf0]  ;;  %v4678_v21 = vld [vmem:[#allocation4 + $0x384] sm:$0xf] }
  0x8d   :  { %v3641_v20 = vld [vmem:[#allocation4 + $0x290] sm:$0xf0] }
  0x8e   :  { %2276 = vmatpush.bf16.msrb.mxu2 %v4120_v45  ;;  %2290 = vmatpush.bf16.msrb.mxu3 %v4248_v47  ;;  %v4586_v45 = vld [vmem:[#allocation4 + $0xa4] sm:$0xf] }
  0x8f   :  { %v3404_v56 = vor.u32 %v4586_v45, %v3401_v46  ;;  %v4602_v45 = vld [vmem:[#allocation4 + $0x124] sm:$0xf]  ;;  %v3465_v46 = vld [vmem:[#allocation4 + $0x130] sm:$0xf0] }
  0x90   :  { %2249 = vmatpush.bf16.msrb.mxu0 %v3848_v38  ;;  %2263 = vmatpush.bf16.msrb.mxu1 %v3976_v42  ;;  %v3420_v38 = vor.u32 %v4590_v28, %v3417_v29  ;;  %v4690_v42 = vld [vmem:[#allocation4 + $0x3e4] sm:$0xf]  ;;  %v167_v28 = vperm.slane %v5064_v2, 4 }
  0x91   :  { %v3820_v55 = vor.u32 %v4690_v42, %v3817_v44  ;;  %v3753_v42 = vld [vmem:[#allocation4 + $0x370] sm:$0xf0] }
  0x92   :  { %2277 = vmatpush.bf16.msrb.mxu2 %v4104_v58  ;;  %2291 = vmatpush.bf16.msrb.mxu3 %v4232_v59  ;;  %v3673_v58 = vld [vmem:[#allocation4 + $0x2d0] sm:$0xf0]  ;;  %v4686_v59 = vld [vmem:[#allocation4 + $0x3c4] sm:$0xf] }
  0x94   :  { %2250 = vmatpush.bf16.msrb.mxu0 %v3832_v51  ;;  %2264 = vmatpush.bf16.msrb.mxu1 %v3960_v53  ;;  %v3692_v53 = vor.u32 %v4658_v39, %v3689_v40  ;;  %v4674_v39 = vld [vmem:[#allocation4 + $0x364] sm:$0xf] }
  0x96   :  { %2278 = vmatpush.bf16.msrb.mxu2 %v4088_v62  ;;  %2292 = vmatpush.bf16.msrb.mxu3 %v4216_v1  ;;  %v3801_v62 = vld [vmem:[#allocation4 + $0x3d0] sm:$0xf0]  ;;  %v4614_v1 = vld [vmem:[#allocation4 + $0x184] sm:$0xf] }
  0xb4   :  { %v514_v3 = vpop.f32.mrf.mxu0  ;;  %v528_v5 = vpop.f32.mrf.mxu1 }
  0xb5   :  { %v515_v7 = vadd.f32 %v514_v3, %v163_v4  ;;  %v529_v8 = vadd.f32 %v528_v5, %v164_v6  ;;  %v3513_v3 = vld [vmem:[#allocation4 + $0x190] sm:$0xf0]  ;;  %v3804_v5 = vor.u32 %v4686_v59, %v3801_v62 }
  0xb6   :  { %v3321_v62 = vld [vmem:[#allocation4 + $0x10] sm:$0xf0] }
  0xb7   :  { %v617_v12 = vmax.f32 %v515_v7, 0.0  ;;  %v618_v17 = vmax.f32 %v529_v8, 0.0  ;;  %v4650_v7 = vld [vmem:[#allocation4 + $0x2a4] sm:$0xf]  ;;  %v3657_v8 = vld [vmem:[#allocation4 + $0x2b0] sm:$0xf0] }
  0xb8   :  { %v3660_v16 = vor.u32 %v4650_v7, %v3657_v8  ;;  %v169_v8 = vperm.slane %v5064_v2, 6 }
  0xbc   :  { %v556_v10 = vpop.f32.mrf.mxu3  ;;  %v516_v11 = vpop.f32.mrf.mxu0 }
  0xbd   :  { %v542_v9 = vpop.f32.mrf.mxu2  ;;  %v517_v13 = vadd.f32 %v516_v11, %v163_v4  ;;  %v530_v14 = vpop.f32.mrf.mxu1  ;;  %v557_v34 = vadd.f32 %v556_v10, %v166_v22  ;;  %v3676_v4 = vor.u32 %v4654_v57, %v3673_v58  ;;  %v3516_v10 = vor.u32 %v4614_v1, %v3513_v3  ;;  %v3785_v11 = vld [vmem:[#allocation4 + $0x3b0] sm:$0xf0]  ;;  %v4566_v57 = vld [vmem:[#allocation4 + $0x4] sm:$0xf] }
  0xbe   :  { %v531_v19 = vadd.f32 %v530_v14, %v164_v6  ;;  %v543_v30 = vadd.f32 %v542_v9, %v165_v18  ;;  %v3388_v6 = vor.u32 %v4582_v63, %v3385_v0  ;;  %v4682_v9 = vld [vmem:[#allocation4 + $0x3a4] sm:$0xf]  ;;  %v3449_v0 = vld [vmem:[#allocation4 + $0x110] sm:$0xf0] }
  0xbf   :  { %v625_v23 = vmax.f32 %v517_v13, 0.0  ;;  %v620_v51 = vmax.f32 %v557_v34, 0.0  ;;  %v3369_v13 = vld [vmem:[#allocation4 + $0x70] sm:$0xf0]  ;;  %v4610_v14 = vld [vmem:[#allocation4 + $0x164] sm:$0xf] }
  0xc0   :  { %v626_v24 = vmax.f32 %v531_v19, 0.0  ;;  %v619_v47 = vmax.f32 %v543_v30, 0.0  ;;  %v4646_v19 = vld [vmem:[#allocation4 + $0x284] sm:$0xf] }
  0xc1   :  { %v5070_v26 = vpack.c.bf16 %v625_v23, %v617_v12  ;;  %v4578_v12 = vld [vmem:[#allocation4 + $0x64] sm:$0xf]  ;;  %v3500_v23 = vor.u32 %v4610_v14, %v3497_v15  ;;  %v3644_v34 = vor.u32 %v4646_v19, %v3641_v20 }
  0xc2   :  { %v5072_v31 = vpack.c.bf16 %v626_v24, %v618_v17  ;;  %v3788_v17 = vor.u32 %v4682_v9, %v3785_v11  ;;  %v3769_v24 = vld [vmem:[#allocation4 + $0x390] sm:$0xf0]  ;;  %v4606_v30 = vld [vmem:[#allocation4 + $0x144] sm:$0xf] }
  0xc3   :  { %2195 = vmatmul.bf16.vlgmr.msra.gmra.mxu0 %v5070_v26  ;;  %v3484_v40 = vor.u32 %v4606_v30, %v3481_v32  ;;  %v4598_v63 = vld [vmem:[#allocation4 + $0x104] sm:$0xf]  ;;  %v3929_v30 = vld [vmem:[#allocation4 + $0x4d0] sm:$0xf0] }
  0xc4   :  { %v558_v37 = vpop.f32.mrf.mxu3  ;;  %2209 = vmatmul.bf16.vlgmr.msra.gmra.mxu1 %v5072_v31  ;;  %2299 = vmatpush.bf16.msra.mxu0 %v3436_v25  ;;  %v4574_v25 = vld [vmem:[#allocation4 + $0x44] sm:$0xf]  ;;  %v3452_v20 = vor.u32 %v4598_v63, %v3449_v0 }
  0xc5   :  { %v544_v35 = vpop.f32.mrf.mxu2  ;;  %v559_v41 = vadd.f32 %v558_v37, %v166_v22  ;;  %2313 = vmatpush.bf16.msra.mxu1 %v3564_v27  ;;  %v3353_v27 = vld [vmem:[#allocation4 + $0x50] sm:$0xf0]  ;;  %v4642_v37 = vld [vmem:[#allocation4 + $0x264] sm:$0xf] }
  0xc6   :  { %v545_v36 = vadd.f32 %v544_v35, %v165_v18  ;;  %v3372_v18 = vor.u32 %v4578_v12, %v3369_v13  ;;  %v3772_v35 = vor.u32 %v4678_v21, %v3769_v24  ;;  %v4754_v11 = vld [vmem:[#allocation4 + $0x5e4] sm:$0xf]  ;;  %v4073_v12 = vld [vmem:[#allocation4 + $0x5f0] sm:$0xf0]  ;;  %v170_v13 = vperm.slane %v5064_v2, 7 }
  0xc7   :  { %v628_v52 = vmax.f32 %v559_v41, 0.0  ;;  %v4570_v41 = vld [vmem:[#allocation4 + $0x24] sm:$0xf]  ;;  %v4076_v2 = vor.u32 %v4754_v11, %v4073_v12  ;;  %v4025_v12 = vld [vmem:[#allocation4 + $0x590] sm:$0xf0] }
  0xc8   :  { %v627_v48 = vmax.f32 %v545_v36, 0.0  ;;  %2300 = vmatpush.bf16.msra.mxu0 %v3420_v38  ;;  %v3356_v36 = vor.u32 %v4574_v25, %v3353_v27  ;;  %v3625_v38 = vld [vmem:[#allocation4 + $0x270] sm:$0xf0]  ;;  %v4666_v21 = vld [vmem:[#allocation4 + $0x324] sm:$0xf] }
  0xc9   :  { %v5078_v60 = vpack.c.bf16 %v628_v52, %v620_v51  ;;  %2314 = vmatpush.bf16.msra.mxu1 %v3548_v43  ;;  %v3337_v43 = vld [vmem:[#allocation4 + $0x30] sm:$0xf0]  ;;  %v3756_v52 = vor.u32 %v4674_v39, %v3753_v42  ;;  %v4750_v32 = vld [vmem:[#allocation4 + $0x5c4] sm:$0xf] }
  0xca   :  { %v5076_v54 = vpack.c.bf16 %v627_v48, %v619_v47  ;;  %v3628_v48 = vor.u32 %v4642_v37, %v3625_v38  ;;  %v4630_v37 = vld [vmem:[#allocation4 + $0x204] sm:$0xf]  ;;  %v3577_v38 = vld [vmem:[#allocation4 + $0x210] sm:$0xf0] }
  0xcb   :  { %2237 = vmatmul.bf16.vlgmr.msra.gmra.mxu3 %v5078_v60  ;;  %v4662_v42 = vld [vmem:[#allocation4 + $0x304] sm:$0xf] }
  0xcc   :  { %2223 = vmatmul.bf16.vlgmr.msra.gmra.mxu2 %v5076_v54  ;;  %2341 = vmatpush.bf16.msra.mxu3 %v3820_v55  ;;  %v4670_v55 = vld [vmem:[#allocation4 + $0x344] sm:$0xf] }
  0xcd   :  { %2327 = vmatpush.bf16.msra.mxu2 %v3692_v53  ;;  %2301 = vmatpush.bf16.msra.mxu0 %v3404_v56  ;;  %v3340_v53 = vor.u32 %v4570_v41, %v3337_v43  ;;  %v3737_v56 = vld [vmem:[#allocation4 + $0x350] sm:$0xf0]  ;;  %v4786_v43 = vld [vmem:[#allocation4 + $0x6e4] sm:$0xf] }
  0xce   :  { %2315 = vmatpush.bf16.msra.mxu1 %v3532_v61  ;;  %v3468_v61 = vor.u32 %v4602_v45, %v3465_v46  ;;  %v3740_v15 = vor.u32 %v4670_v55, %v3737_v56  ;;  %v3705_v41 = vld [vmem:[#allocation4 + $0x310] sm:$0xf0]  ;;  %v4742_v11 = vld [vmem:[#allocation4 + $0x584] sm:$0xf] }
  0xcf   :  { %v4201_v46 = vld [vmem:[#allocation4 + $0x6f0] sm:$0xf0] }
  0xd0   :  { %2342 = vmatpush.bf16.msra.mxu3 %v3804_v5  ;;  %v4722_v5 = vld [vmem:[#allocation4 + $0x4e4] sm:$0xf]  ;;  %v3913_v55 = vld [vmem:[#allocation4 + $0x4b0] sm:$0xf0]  ;;  %v4204_v63 = vor.u32 %v4786_v43, %v4201_v46 }
  0xd1   :  { %2328 = vmatpush.bf16.msra.mxu2 %v3676_v4  ;;  %2302 = vmatpush.bf16.msra.mxu0 %v3388_v6  ;;  %v3945_v6 = vld [vmem:[#allocation4 + $0x4f0] sm:$0xf0]  ;;  %v4802_v46 = vld [vmem:[#allocation4 + $0x764] sm:$0xf] }
  0xd2   :  { %2316 = vmatpush.bf16.msra.mxu1 %v3516_v10  ;;  %v3612_v10 = vor.u32 %v4638_v49, %v3609_v50  ;;  %v3948_v24 = vor.u32 %v4722_v5, %v3945_v6  ;;  %v4185_v5 = vld [vmem:[#allocation4 + $0x6d0] sm:$0xf0]  ;;  %v4814_v6 = vld [vmem:[#allocation4 + $0x7c4] sm:$0xf] }
  0xd3   :  { %v4137_v43 = vld [vmem:[#allocation4 + $0x670] sm:$0xf0] }
  0xd4   :  { %v570_v22 = vpop.f32.mrf.mxu0  ;;  %v584_v29 = vpop.f32.mrf.mxu1  ;;  %2343 = vmatpush.bf16.msra.mxu3 %v3788_v17  ;;  %v4634_v17 = vld [vmem:[#allocation4 + $0x224] sm:$0xf] }
  0xd5   :  { %2329 = vmatpush.bf16.msra.mxu2 %v3660_v16  ;;  %2303 = vmatpush.bf16.msra.mxu0 %v3372_v18  ;;  %v571_v44 = vadd.f32 %v570_v22, %v167_v28  ;;  %v585_v47 = vadd.f32 %v584_v29, %v168_v33  ;;  %v3324_v16 = vor.u32 %v4566_v57, %v3321_v62  ;;  %v3593_v18 = vld [vmem:[#allocation4 + $0x230] sm:$0xf0]  ;;  %v4718_v29 = vld [vmem:[#allocation4 + $0x4c4] sm:$0xf] }
  0xd6   :  { %2317 = vmatpush.bf16.msra.mxu1 %v3500_v23  ;;  %v3721_v22 = vld [vmem:[#allocation4 + $0x330] sm:$0xf0]  ;;  %v3932_v45 = vor.u32 %v4718_v29, %v3929_v30  ;;  %v4774_v29 = vld [vmem:[#allocation4 + $0x684] sm:$0xf] }
  0xd7   :  { %v621_v1 = vmax.f32 %v571_v44, 0.0  ;;  %v622_v7 = vmax.f32 %v585_v47, 0.0  ;;  %v4818_v47 = vld [vmem:[#allocation4 + $0x7e4] sm:$0xf]  ;;  %v4153_v30 = vld [vmem:[#allocation4 + $0x690] sm:$0xf0] }
  0xd8   :  { %2344 = vmatpush.bf16.msra.mxu3 %v3772_v35  ;;  %v3724_v35 = vor.u32 %v4666_v21, %v3721_v22  ;;  %v4706_v21 = vld [vmem:[#allocation4 + $0x464] sm:$0xf]  ;;  %v3881_v22 = vld [vmem:[#allocation4 + $0x470] sm:$0xf0] }
  0xd9   :  { %2330 = vmatpush.bf16.msra.mxu2 %v3644_v34  ;;  %2304 = vmatpush.bf16.msra.mxu0 %v3356_v36  ;;  %v4057_v36 = vld [vmem:[#allocation4 + $0x5d0] sm:$0xf0] }
  0xda   :  { %2318 = vmatpush.bf16.msra.mxu1 %v3484_v40 }
  0xdc   :  { %v598_v51 = vpop.f32.mrf.mxu2  ;;  %v612_v58 = vpop.f32.mrf.mxu3  ;;  %2345 = vmatpush.bf16.msra.mxu3 %v3756_v52  ;;  %v3580_v52 = vor.u32 %v4630_v37, %v3577_v38  ;;  %v3865_v37 = vld [vmem:[#allocation4 + $0x450] sm:$0xf0]  ;;  %v4734_v38 = vld [vmem:[#allocation4 + $0x544] sm:$0xf] }
  0xdd   :  { %v572_v59 = vpop.f32.mrf.mxu0  ;;  %v586_v4 = vpop.f32.mrf.mxu1  ;;  %2331 = vmatpush.bf16.msra.mxu2 %v3628_v48  ;;  %2305 = vmatpush.bf16.msra.mxu0 %v3340_v53  ;;  %v599_v25 = vadd.f32 %v598_v51, %v169_v8  ;;  %v4329_v48 = vld [vmem:[#allocation4 + $0x7f0] sm:$0xf0]  ;;  %v4060_v51 = vor.u32 %v4750_v32, %v4057_v36  ;;  %v4714_v53 = vld [vmem:[#allocation4 + $0x4a4] sm:$0xf]  ;;  %v3884_v32 = vor.u32 %v4706_v21, %v3881_v22  ;;  %v4593_v21 = vld [vmem:[#allocation4 + $0xd4] sm:$0xf0] }
  0xde   :  { %v573_v3 = vadd.f32 %v572_v59, %v167_v28  ;;  %v587_v9 = vadd.f32 %v586_v4, %v168_v33  ;;  %2319 = vmatpush.bf16.msra.mxu1 %v3468_v61  ;;  %v3596_v28 = vor.u32 %v4634_v17, %v3593_v18  ;;  %v613_v33 = vadd.f32 %v612_v58, %v170_v13  ;;  %v4746_v59 = vld [vmem:[#allocation4 + $0x5a4] sm:$0xf]  ;;  %v4041_v61 = vld [vmem:[#allocation4 + $0x5b0] sm:$0xf0]  ;;  %v3551_v22 = vld [vmem:[#allocation4 + $0x1c8] sm:$0xf] }
  0xdf   :  { %v623_v49 = vmax.f32 %v599_v25, 0.0  ;;  %v3708_v58 = vor.u32 %v4662_v42, %v3705_v41  ;;  %v4782_v4 = vld [vmem:[#allocation4 + $0x6c4] sm:$0xf]  ;;  %v4169_v17 = vld [vmem:[#allocation4 + $0x6b0] sm:$0xf0]  ;;  %v4028_v18 = vor.u32 %v4742_v11, %v4025_v12 }
  0xe0   :  { %v629_v14 = vmax.f32 %v573_v3, 0.0  ;;  %v630_v19 = vmax.f32 %v587_v9, 0.0  ;;  %2346 = vmatpush.bf16.msra.mxu3 %v3740_v15  ;;  %v624_v56 = vmax.f32 %v613_v33, 0.0  ;;  %v3916_v3 = vor.u32 %v4714_v53, %v3913_v55  ;;  %v4710_v9 = vld [vmem:[#allocation4 + $0x484] sm:$0xf] }
  0xe1   :  { %2332 = vmatpush.bf16.msra.mxu2 %v3612_v10  ;;  %2306 = vmatpush.bf16.msra.mxu0 %v3324_v16  ;;  %v3897_v10 = vld [vmem:[#allocation4 + $0x490] sm:$0xf0]  ;;  %v4778_v16 = vld [vmem:[#allocation4 + $0x6a4] sm:$0xf] }
  0xe2   :  { %v5086_v23 = vpack.c.bf16 %v629_v14, %v621_v1  ;;  %v5088_v27 = vpack.c.bf16 %v630_v19, %v622_v7  ;;  %2320 = vmatpush.bf16.msra.mxu1 %v3452_v20  ;;  %v4332_v1 = vor.u32 %v4818_v47, %v4329_v48  ;;  %v4044_v7 = vor.u32 %v4746_v59, %v4041_v61  ;;  %v4810_v19 = vld [vmem:[#allocation4 + $0x7a4] sm:$0xf]  ;;  %v4297_v20 = vld [vmem:[#allocation4 + $0x7b0] sm:$0xf0] }
  0xe3   :  { %v3900_v15 = vor.u32 %v4710_v9, %v3897_v10  ;;  %v4009_v25 = vld [vmem:[#allocation4 + $0x570] sm:$0xf0]  ;;  %v4702_v36 = vld [vmem:[#allocation4 + $0x444] sm:$0xf]  ;;  %v4629_v9 = vld [vmem:[#allocation4 + $0x1f4] sm:$0xf0] }
  0xe4   :  { %v600_v34 = vpop.f32.mrf.mxu2  ;;  %v614_v40 = vpop.f32.mrf.mxu3  ;;  %2251 = vmatmul.bf16.vlgmr.msrb.gmra.mxu0 %v5086_v23  ;;  %2265 = vmatmul.bf16.vlgmr.msrb.gmra.mxu1 %v5088_v27  ;;  %v4770_v41 = vld [vmem:[#allocation4 + $0x664] sm:$0xf]  ;;  %v4265_v47 = vld [vmem:[#allocation4 + $0x770] sm:$0xf0] }
  0xe5   :  { %v601_v39 = vadd.f32 %v600_v34, %v169_v8  ;;  %v615_v44 = vadd.f32 %v614_v40, %v170_v13  ;;  %2355 = vmatpush.bf16.msrb.mxu0 %v3948_v24  ;;  %2333 = vmatpush.bf16.msra.mxu2 %v3596_v28  ;;  %v4313_v8 = vld [vmem:[#allocation4 + $0x7d0] sm:$0xf0]  ;;  %v4188_v13 = vor.u32 %v4782_v4, %v4185_v5  ;;  %v4738_v24 = vld [vmem:[#allocation4 + $0x564] sm:$0xf]  ;;  %v3439_v5 = vld [vmem:[#allocation4 + $0xe8] sm:$0xf] }
  0xe6   :  { %2369 = vmatpush.bf16.msrb.mxu1 %v4076_v2  ;;  %2347 = vmatpush.bf16.msra.mxu3 %v3724_v35  ;;  %v4316_v14 = vor.u32 %v4814_v6, %v4313_v8  ;;  %v4172_v2 = vor.u32 %v4778_v16, %v4169_v17  ;;  %v4300_v28 = vor.u32 %v4810_v19, %v4297_v20  ;;  %v4806_v34 = vld [vmem:[#allocation4 + $0x784] sm:$0xf]  ;;  %v4281_v35 = vld [vmem:[#allocation4 + $0x790] sm:$0xf0]  ;;  %v3567_v8 = vld [vmem:[#allocation4 + $0x1e8] sm:$0xf] }
  0xe7   :  { %v631_v50 = vmax.f32 %v601_v39, 0.0  ;;  %v632_v57 = vmax.f32 %v615_v44, 0.0  ;;  %v4012_v33 = vor.u32 %v4738_v24, %v4009_v25  ;;  %v3993_v39 = vld [vmem:[#allocation4 + $0x550] sm:$0xf0]  ;;  %v4156_v40 = vor.u32 %v4774_v29, %v4153_v30  ;;  %v4698_v48 = vld [vmem:[#allocation4 + $0x424] sm:$0xf] }
  0xe8   :  { %v4284_v42 = vor.u32 %v4806_v34, %v4281_v35  ;;  %v3868_v44 = vor.u32 %v4702_v36, %v3865_v37  ;;  %v4268_v53 = vor.u32 %v4802_v46, %v4265_v47  ;;  %v4766_v55 = vld [vmem:[#allocation4 + $0x644] sm:$0xf]  ;;  %v4249_v61 = vld [vmem:[#allocation4 + $0x750] sm:$0xf0]  ;;  %v3423_v19 = vld [vmem:[#allocation4 + $0xc8] sm:$0xf] }
  0xe9   :  { %v5092_v62 = vpack.c.bf16 %v631_v50, %v623_v49  ;;  %v5094_v0 = vpack.c.bf16 %v632_v57, %v624_v56  ;;  %2356 = vmatpush.bf16.msrb.mxu0 %v3932_v45  ;;  %2334 = vmatpush.bf16.msra.mxu2 %v3580_v52  ;;  %v3996_v45 = vor.u32 %v4734_v38, %v3993_v39  ;;  %v3849_v49 = vld [vmem:[#allocation4 + $0x430] sm:$0xf0]  ;;  %v4730_v50 = vld [vmem:[#allocation4 + $0x524] sm:$0xf]  ;;  %v4625_v24 = vld [vmem:[#allocation4 + $0x1d4] sm:$0xf0] }
  0xea   :  { %2370 = vmatpush.bf16.msrb.mxu1 %v4060_v51  ;;  %2348 = vmatpush.bf16.msra.mxu3 %v3708_v58  ;;  %v3977_v51 = vld [vmem:[#allocation4 + $0x530] sm:$0xf0]  ;;  %v4140_v52 = vor.u32 %v4770_v41, %v4137_v43  ;;  %v4798_v57 = vld [vmem:[#allocation4 + $0x744] sm:$0xf]  ;;  %v3852_v58 = vor.u32 %v4698_v48, %v3849_v49  ;;  %v3424_v34 = vor.u32 %v4593_v21, %v3423_v19  ;;  %v3823_v36 = vld [vmem:[#allocation4 + $0x3e8] sm:$0xf] }
  0xeb   :  { %2279 = vmatmul.bf16.vlgmr.msrb.gmra.mxu2 %v5092_v62  ;;  %2293 = vmatmul.bf16.vlgmr.msrb.gmra.mxu3 %v5094_v0  ;;  %v4121_v56 = vld [vmem:[#allocation4 + $0x650] sm:$0xf0]  ;;  %v3980_v59 = vor.u32 %v4730_v50, %v3977_v51  ;;  %v4252_v10 = vor.u32 %v4798_v57, %v4249_v61  ;;  %v4762_v11 = vld [vmem:[#allocation4 + $0x624] sm:$0xf]  ;;  %v3552_v35 = vor.u32 %v4625_v24, %v3551_v22  ;;  %v4693_v37 = vld [vmem:[#allocation4 + $0x3f4] sm:$0xf0] }
  0xec   :  { %v3961_v4 = vld [vmem:[#allocation4 + $0x510] sm:$0xf0]  ;;  %v4124_v6 = vor.u32 %v4766_v55, %v4121_v56  ;;  %v4790_v29 = vld [vmem:[#allocation4 + $0x704] sm:$0xf]  ;;  %v3407_v38 = vld [vmem:[#allocation4 + $0xa8] sm:$0xf] }
  0xed   :  { %2383 = vmatpush.bf16.msrb.mxu2 %v4204_v63  ;;  %2357 = vmatpush.bf16.msrb.mxu0 %v3916_v3  ;;  %v4694_v63 = vld [vmem:[#allocation4 + $0x404] sm:$0xf]  ;;  %v4105_v12 = vld [vmem:[#allocation4 + $0x630] sm:$0xf0]  ;;  %v4621_v41 = vld [vmem:[#allocation4 + $0x1b4] sm:$0xf0] }
  0xee   :  { %2397 = vmatpush.bf16.msrb.mxu3 %v4332_v1  ;;  %2371 = vmatpush.bf16.msrb.mxu1 %v4044_v7  ;;  %v3833_v1 = vld [vmem:[#allocation4 + $0x410] sm:$0xf0]  ;;  %v4726_v3 = vld [vmem:[#allocation4 + $0x504] sm:$0xf]  ;;  %v4597_v7 = vld [vmem:[#allocation4 + $0xf4] sm:$0xf0]  ;;  %v4108_v20 = vor.u32 %v4762_v11, %v4105_v12 }
  0xef   :  { %v4233_v16 = vld [vmem:[#allocation4 + $0x730] sm:$0xf0]  ;;  %v3440_v17 = vor.u32 %v4597_v7, %v3439_v5  ;;  %v3679_v46 = vld [vmem:[#allocation4 + $0x2c8] sm:$0xf]  ;;  %v4657_v47 = vld [vmem:[#allocation4 + $0x2d4] sm:$0xf0] }
  0xf0   :  { %v4217_v30 = vld [vmem:[#allocation4 + $0x710] sm:$0xf0]  ;;  %v3807_v50 = vld [vmem:[#allocation4 + $0x3c8] sm:$0xf]  ;;  %v4689_v51 = vld [vmem:[#allocation4 + $0x3d4] sm:$0xf0]  ;;  %v3680_v57 = vor.u32 %v4657_v47, %v3679_v46 }
  0xf1   :  { %2384 = vmatpush.bf16.msrb.mxu2 %v4188_v13  ;;  %2358 = vmatpush.bf16.msrb.mxu0 %v3900_v15  ;;  %v3836_v13 = vor.u32 %v4694_v63, %v3833_v1  ;;  %v4794_v15 = vld [vmem:[#allocation4 + $0x724] sm:$0xf]  ;;  %v4220_v43 = vor.u32 %v4790_v29, %v4217_v30  ;;  %v3519_v55 = vld [vmem:[#allocation4 + $0x188] sm:$0xf]  ;;  %v4617_v56 = vld [vmem:[#allocation4 + $0x194] sm:$0xf0] }
  0xf2   :  { %2398 = vmatpush.bf16.msrb.mxu3 %v4316_v14  ;;  %2372 = vmatpush.bf16.msrb.mxu1 %v4028_v18  ;;  %v3964_v14 = vor.u32 %v4726_v3, %v3961_v4  ;;  %v3568_v18 = vor.u32 %v4629_v9, %v3567_v8  ;;  %v4236_v25 = vor.u32 %v4794_v15, %v4233_v16  ;;  %v4653_v61 = vld [vmem:[#allocation4 + $0x2b4] sm:$0xf0]  ;;  %v3791_v3 = vld [vmem:[#allocation4 + $0x3a8] sm:$0xf] }
  0xf3   :  { %v3520_v1 = vor.u32 %v4617_v56, %v3519_v55  ;;  %v4685_v4 = vld [vmem:[#allocation4 + $0x3b4] sm:$0xf0]  ;;  %v3375_v5 = vld [vmem:[#allocation4 + $0x68] sm:$0xf] }
  0xf4   :  { %2307 = vmatmul.bf16.vlgmr.msra.gmra.mxu0 %v5070_v26  ;;  %2321 = vmatmul.bf16.vlgmr.msra.gmra.mxu1 %v5072_v31  ;;  %v3503_v7 = vld [vmem:[#allocation4 + $0x168] sm:$0xf]  ;;  %v4613_v8 = vld [vmem:[#allocation4 + $0x174] sm:$0xf0] }
  0xf5   :  { %2385 = vmatpush.bf16.msrb.mxu2 %v4172_v2  ;;  %2359 = vmatpush.bf16.msrb.mxu0 %v3884_v32  ;;  %v4758_v2 = vld [vmem:[#allocation4 + $0x604] sm:$0xf]  ;;  %v3695_v32 = vld [vmem:[#allocation4 + $0x2e8] sm:$0xf]  ;;  %v4649_v12 = vld [vmem:[#allocation4 + $0x294] sm:$0xf0] }
  0xf6   :  { %2399 = vmatpush.bf16.msrb.mxu3 %v4300_v28  ;;  %2373 = vmatpush.bf16.msrb.mxu1 %v4012_v33  ;;  %v4089_v28 = vld [vmem:[#allocation4 + $0x610] sm:$0xf0]  ;;  %v4661_v33 = vld [vmem:[#allocation4 + $0x2f4] sm:$0xf0]  ;;  %v3647_v11 = vld [vmem:[#allocation4 + $0x288] sm:$0xf] }
  0xf7   :  { %v4092_v39 = vor.u32 %v4758_v2, %v4089_v28  ;;  %v3775_v15 = vld [vmem:[#allocation4 + $0x388] sm:$0xf]  ;;  %v4681_v16 = vld [vmem:[#allocation4 + $0x394] sm:$0xf0]  ;;  %v3648_v21 = vor.u32 %v4649_v12, %v3647_v11 }
  0xf8   :  { %v3487_v19 = vld [vmem:[#allocation4 + $0x148] sm:$0xf]  ;;  %v3776_v22 = vor.u32 %v4681_v16, %v3775_v15  ;;  %v4677_v30 = vld [vmem:[#allocation4 + $0x374] sm:$0xf0] }
  0xf9   :  { %2386 = vmatpush.bf16.msrb.mxu2 %v4156_v40  ;;  %2360 = vmatpush.bf16.msrb.mxu0 %v3868_v44  ;;  %v4589_v40 = vld [vmem:[#allocation4 + $0xb4] sm:$0xf0]  ;;  %v3696_v44 = vor.u32 %v4661_v33, %v3695_v32  ;;  %v3631_v24 = vld [vmem:[#allocation4 + $0x268] sm:$0xf] }
  0xfa   :  { %2400 = vmatpush.bf16.msrb.mxu3 %v4284_v42  ;;  %2374 = vmatpush.bf16.msrb.mxu1 %v3996_v45  ;;  %v3535_v42 = vld [vmem:[#allocation4 + $0x1a8] sm:$0xf]  ;;  %v3824_v45 = vor.u32 %v4693_v37, %v3823_v36  ;;  %v3408_v48 = vor.u32 %v4589_v40, %v3407_v38  ;;  %v4573_v33 = vld [vmem:[#allocation4 + $0x34] sm:$0xf0] }
  0xfb   :  { %2335 = vmatmul.bf16.vlgmr.msra.gmra.mxu2 %v5076_v54  ;;  %2349 = vmatmul.bf16.vlgmr.msra.gmra.mxu3 %v5078_v60  ;;  %v3536_v49 = vor.u32 %v4621_v41, %v3535_v42  ;;  %v3759_v29 = vld [vmem:[#allocation4 + $0x368] sm:$0xf]  ;;  %v4601_v47 = vld [vmem:[#allocation4 + $0x114] sm:$0xf0] }
  0xfc   :  { %v3343_v32 = vld [vmem:[#allocation4 + $0x28] sm:$0xf]  ;;  %v3760_v37 = vor.u32 %v4677_v30, %v3759_v29  ;;  %v4637_v56 = vld [vmem:[#allocation4 + $0x234] sm:$0xf0] }
  0xfd   :  { %2387 = vmatpush.bf16.msrb.mxu2 %v4140_v52  ;;  %2361 = vmatpush.bf16.msrb.mxu0 %v3852_v58  ;;  %v3391_v52 = vld [vmem:[#allocation4 + $0x88] sm:$0xf]  ;;  %v3808_v58 = vor.u32 %v4689_v51, %v3807_v50  ;;  %v3344_v42 = vor.u32 %v4573_v33, %v3343_v32  ;;  %v4725_v50 = vld [vmem:[#allocation4 + $0x4f4] sm:$0xf0] }
  0xfe   :  { %2401 = vmatpush.bf16.msrb.mxu3 %v4268_v53  ;;  %2375 = vmatpush.bf16.msrb.mxu1 %v3980_v59  ;;  %v4585_v53 = vld [vmem:[#allocation4 + $0x94] sm:$0xf0]  ;;  %v3663_v59 = vld [vmem:[#allocation4 + $0x2a8] sm:$0xf] }
  0xff   :  { %v3392_v63 = vor.u32 %v4585_v53, %v3391_v52  ;;  %v3664_v9 = vor.u32 %v4653_v61, %v3663_v59  ;;  %v3615_v38 = vld [vmem:[#allocation4 + $0x248] sm:$0xf]  ;;  %v4757_v52 = vld [vmem:[#allocation4 + $0x5f4] sm:$0xf0] }
 0x100   :  { %v3743_v40 = vld [vmem:[#allocation4 + $0x348] sm:$0xf]  ;;  %v4669_v61 = vld [vmem:[#allocation4 + $0x334] sm:$0xf0] }
 0x101   :  { %2388 = vmatpush.bf16.msrb.mxu2 %v4124_v6  ;;  %2362 = vmatpush.bf16.msrb.mxu0 %v3836_v13  ;;  %v4581_v6 = vld [vmem:[#allocation4 + $0x74] sm:$0xf0]  ;;  %v3455_v46 = vld [vmem:[#allocation4 + $0x108] sm:$0xf] }
 0x102   :  { %2402 = vmatpush.bf16.msrb.mxu3 %v4252_v10  ;;  %2376 = vmatpush.bf16.msrb.mxu1 %v3964_v14  ;;  %v3792_v10 = vor.u32 %v4685_v4, %v3791_v3  ;;  %v3376_v13 = vor.u32 %v4581_v6, %v3375_v5  ;;  %v3504_v14 = vor.u32 %v4613_v8, %v3503_v7  ;;  %v4079_v51 = vld [vmem:[#allocation4 + $0x5e8] sm:$0xf]  ;;  %v4721_v5 = vld [vmem:[#allocation4 + $0x4d4] sm:$0xf0] }
 0x103   :  { %v3599_v55 = vld [vmem:[#allocation4 + $0x228] sm:$0xf]  ;;  %v4753_v7 = vld [vmem:[#allocation4 + $0x5d4] sm:$0xf0] }
 0x104   :  { %2363 = vmatmul.bf16.vlgmr.msrb.gmra.mxu0 %v5086_v23  ;;  %v3727_v59 = vld [vmem:[#allocation4 + $0x328] sm:$0xf]  ;;  %v3600_v4 = vor.u32 %v4637_v56, %v3599_v55  ;;  %v4665_v12 = vld [vmem:[#allocation4 + $0x314] sm:$0xf0] }
 0x105   :  { %2411 = vmatpush.bf16.msra.mxu0 %v3440_v17  ;;  %2389 = vmatpush.bf16.msrb.mxu2 %v4108_v20  ;;  %v3359_v17 = vld [vmem:[#allocation4 + $0x48] sm:$0xf]  ;;  %v4609_v20 = vld [vmem:[#allocation4 + $0x154] sm:$0xf0]  ;;  %v3728_v8 = vor.u32 %v4669_v61, %v3727_v59 }
 0x106   :  { %2425 = vmatpush.bf16.msra.mxu1 %v3568_v18  ;;  %2403 = vmatpush.bf16.msrb.mxu3 %v4236_v25  ;;  %v4577_v18 = vld [vmem:[#allocation4 + $0x54] sm:$0xf0]  ;;  %v3488_v28 = vor.u32 %v4609_v20, %v3487_v19  ;;  %v3935_v3 = vld [vmem:[#allocation4 + $0x4c8] sm:$0xf] }
 0x107   :  { %2377 = vmatmul.bf16.vlgmr.msrb.gmra.mxu1 %v5088_v27  ;;  %v4645_v25 = vld [vmem:[#allocation4 + $0x274] sm:$0xf0]  ;;  %v3360_v2 = vor.u32 %v4577_v18, %v3359_v17  ;;  %v4063_v6 = vld [vmem:[#allocation4 + $0x5c8] sm:$0xf]  ;;  %v3936_v15 = vor.u32 %v4721_v5, %v3935_v3 }
 0x108   :  { %v3632_v36 = vor.u32 %v4645_v25, %v3631_v24  ;;  %v3711_v11 = vld [vmem:[#allocation4 + $0x308] sm:$0xf]  ;;  %v4064_v16 = vor.u32 %v4753_v7, %v4063_v6  ;;  %v4821_v18 = vld [vmem:[#allocation4 + $0x7f4] sm:$0xf0] }
 0x109   :  { %2412 = vmatpush.bf16.msra.mxu0 %v3424_v34  ;;  %2390 = vmatpush.bf16.msrb.mxu2 %v4092_v39  ;;  %v3471_v34 = vld [vmem:[#allocation4 + $0x128] sm:$0xf]  ;;  %v4641_v39 = vld [vmem:[#allocation4 + $0x254] sm:$0xf0] }
 0x10a   :  { %2426 = vmatpush.bf16.msra.mxu1 %v3552_v35  ;;  %2404 = vmatpush.bf16.msrb.mxu3 %v4220_v43  ;;  %v4605_v35 = vld [vmem:[#allocation4 + $0x134] sm:$0xf0]  ;;  %v4335_v17 = vld [vmem:[#allocation4 + $0x7e8] sm:$0xf] }
 0x10b   :  { %v3472_v41 = vor.u32 %v4605_v35, %v3471_v34  ;;  %v4673_v43 = vld [vmem:[#allocation4 + $0x354] sm:$0xf0]  ;;  %v3919_v20 = vld [vmem:[#allocation4 + $0x4a8] sm:$0xf] }
 0x10c   :  { %2391 = vmatmul.bf16.vlgmr.msrb.gmra.mxu2 %v5092_v62  ;;  %v3744_v53 = vor.u32 %v4673_v43, %v3743_v40  ;;  %v4047_v25 = vld [vmem:[#allocation4 + $0x5a8] sm:$0xf]  ;;  %v4785_v30 = vld [vmem:[#allocation4 + $0x6d4] sm:$0xf0] }
 0x10d   :  { %2439 = vmatpush.bf16.msra.mxu2 %v3696_v44  ;;  %2413 = vmatpush.bf16.msra.mxu0 %v3408_v48  ;;  %v3327_v44 = vld [vmem:[#allocation4 + $0x8] sm:$0xf]  ;;  %v4817_v34 = vld [vmem:[#allocation4 + $0x7d4] sm:$0xf0] }
 0x10e   :  { %2453 = vmatpush.bf16.msra.mxu3 %v3824_v45  ;;  %2427 = vmatpush.bf16.msra.mxu1 %v3536_v49  ;;  %v4569_v45 = vld [vmem:[#allocation4 + $0x14] sm:$0xf0]  ;;  %v3951_v48 = vld [vmem:[#allocation4 + $0x4e8] sm:$0xf]  ;;  %v3616_v49 = vor.u32 %v4641_v39, %v3615_v38 }
 0x10f   :  { %2405 = vmatmul.bf16.vlgmr.msrb.gmra.mxu3 %v5094_v0  ;;  %v4191_v29 = vld [vmem:[#allocation4 + $0x6c8] sm:$0xf]  ;;  %v4745_v40 = vld [vmem:[#allocation4 + $0x594] sm:$0xf0] }
 0x110   :  { %v4319_v33 = vld [vmem:[#allocation4 + $0x7c8] sm:$0xf]  ;;  %v4192_v38 = vor.u32 %v4785_v30, %v4191_v29  ;;  %v4781_v43 = vld [vmem:[#allocation4 + $0x6b4] sm:$0xf0] }
 0x111   :  { %2440 = vmatpush.bf16.msra.mxu2 %v3680_v57  ;;  %2414 = vmatpush.bf16.msra.mxu0 %v3392_v63  ;;  %v3328_v57 = vor.u32 %v4569_v45, %v3327_v44  ;;  %v3952_v63 = vor.u32 %v4725_v50, %v3951_v48  ;;  %v4031_v39 = vld [vmem:[#allocation4 + $0x588] sm:$0xf]  ;;  %v4777_v56 = vld [vmem:[#allocation4 + $0x694] sm:$0xf0] }
 0x112   :  { %2454 = vmatpush.bf16.msra.mxu3 %v3808_v58  ;;  %2428 = vmatpush.bf16.msra.mxu1 %v3520_v1  ;;  %v3456_v58 = vor.u32 %v4601_v47, %v3455_v46  ;;  %v4080_v1 = vor.u32 %v4757_v52, %v4079_v51  ;;  %v4303_v45 = vld [vmem:[#allocation4 + $0x7a8] sm:$0xf]  ;;  %v4813_v46 = vld [vmem:[#allocation4 + $0x7b4] sm:$0xf0]  ;;  %v4032_v47 = vor.u32 %v4745_v40, %v4031_v39 }
 0x113   :  { %v3887_v48 = vld [vmem:[#allocation4 + $0x468] sm:$0xf]  ;;  %v4741_v52 = vld [vmem:[#allocation4 + $0x574] sm:$0xf0] }
 0x114   :  { %v4015_v51 = vld [vmem:[#allocation4 + $0x568] sm:$0xf]  ;;  %v4809_v59 = vld [vmem:[#allocation4 + $0x794] sm:$0xf0] }
 0x115   :  { %2441 = vmatpush.bf16.msra.mxu2 %v3664_v9  ;;  %2415 = vmatpush.bf16.msra.mxu0 %v3376_v13  ;;  %v3583_v9 = vld [vmem:[#allocation4 + $0x208] sm:$0xf]  ;;  %v4016_v61 = vor.u32 %v4741_v52, %v4015_v51  ;;  %v4737_v5 = vld [vmem:[#allocation4 + $0x554] sm:$0xf0] }
 0x116   :  { %2455 = vmatpush.bf16.msra.mxu3 %v3792_v10  ;;  %2429 = vmatpush.bf16.msra.mxu1 %v3504_v14  ;;  %v4633_v10 = vld [vmem:[#allocation4 + $0x214] sm:$0xf0]  ;;  %v4207_v13 = vld [vmem:[#allocation4 + $0x6e8] sm:$0xf] }
 0x117   :  { %v4789_v14 = vld [vmem:[#allocation4 + $0x6f4] sm:$0xf0]  ;;  %v3584_v19 = vor.u32 %v4633_v10, %v3583_v9  ;;  %v4159_v55 = vld [vmem:[#allocation4 + $0x688] sm:$0xf] }
 0x118   :  { %v4208_v24 = vor.u32 %v4789_v14, %v4207_v13  ;;  %v4160_v3 = vor.u32 %v4777_v56, %v4159_v55  ;;  %v4143_v7 = vld [vmem:[#allocation4 + $0x668] sm:$0xf]  ;;  %v4701_v14 = vld [vmem:[#allocation4 + $0x434] sm:$0xf0] }
 0x119   :  { %2442 = vmatpush.bf16.msra.mxu2 %v3648_v21  ;;  %2416 = vmatpush.bf16.msra.mxu0 %v3360_v2  ;;  %v4717_v21 = vld [vmem:[#allocation4 + $0x4b4] sm:$0xf0]  ;;  %v4271_v10 = vld [vmem:[#allocation4 + $0x768] sm:$0xf] }
 0x11a   :  { %2456 = vmatpush.bf16.msra.mxu3 %v3776_v22  ;;  %2430 = vmatpush.bf16.msra.mxu1 %v3488_v28  ;;  %v3712_v22 = vor.u32 %v4665_v12, %v3711_v11  ;;  %v4749_v2 = vld [vmem:[#allocation4 + $0x5b4] sm:$0xf0]  ;;  %v4336_v28 = vor.u32 %v4821_v18, %v4335_v17  ;;  %v3920_v32 = vor.u32 %v4717_v21, %v3919_v20  ;;  %v3855_v13 = vld [vmem:[#allocation4 + $0x428] sm:$0xf] }
 0x11b   :  { %v4048_v35 = vor.u32 %v4749_v2, %v4047_v25  ;;  %v4805_v11 = vld [vmem:[#allocation4 + $0x774] sm:$0xf0]  ;;  %v3856_v21 = vor.u32 %v4701_v14, %v3855_v13  ;;  %v3839_v25 = vld [vmem:[#allocation4 + $0x408] sm:$0xf]  ;;  %v4687_v14 = vld [vmem:[#allocation4 + $0x3cc] sm:$0xf] }
 0x11c   :  { %v4733_v17 = vld [vmem:[#allocation4 + $0x534] sm:$0xf0]  ;;  %v4272_v18 = vor.u32 %v4805_v11, %v4271_v10  ;;  %v3967_v29 = vld [vmem:[#allocation4 + $0x508] sm:$0xf]  ;;  %v4655_v11 = vld [vmem:[#allocation4 + $0x2cc] sm:$0xf] }
 0x11d   :  { %2443 = vmatpush.bf16.msra.mxu2 %v3632_v36  ;;  %2417 = vmatpush.bf16.msra.mxu0 %v3344_v42  ;;  %v3903_v36 = vld [vmem:[#allocation4 + $0x488] sm:$0xf]  ;;  %v4320_v42 = vor.u32 %v4817_v34, %v4319_v33  ;;  %v4769_v20 = vld [vmem:[#allocation4 + $0x654] sm:$0xf0]  ;;  %v4595_v33 = vld [vmem:[#allocation4 + $0xec] sm:$0xf] }
 0x11e   :  { %2457 = vmatpush.bf16.msra.mxu3 %v3760_v37  ;;  %2431 = vmatpush.bf16.msra.mxu1 %v3472_v41  ;;  %v4713_v37 = vld [vmem:[#allocation4 + $0x494] sm:$0xf0]  ;;  %v4175_v41 = vld [vmem:[#allocation4 + $0x6a8] sm:$0xf]  ;;  %v3441_v34 = vld [vmem:[#allocation4 + $0xf8] sm:$0xf0] }
 0x11f   :  { %v3904_v44 = vor.u32 %v4713_v37, %v3903_v36  ;;  %v4176_v50 = vor.u32 %v4781_v43, %v4175_v41  ;;  %v4729_v30 = vld [vmem:[#allocation4 + $0x514] sm:$0xf0]  ;;  %v3569_v37 = vld [vmem:[#allocation4 + $0x1f8] sm:$0xf0]  ;;  %v4095_v52 = vld [vmem:[#allocation4 + $0x608] sm:$0xf] }
 0x120   :  { %v4765_v39 = vld [vmem:[#allocation4 + $0x634] sm:$0xf0]  ;;  %v3968_v43 = vor.u32 %v4729_v30, %v3967_v29  ;;  %v4223_v55 = vld [vmem:[#allocation4 + $0x708] sm:$0xf]  ;;  %v3793_v29 = vld [vmem:[#allocation4 + $0x3b8] sm:$0xf0] }
 0x121   :  { %2444 = vmatpush.bf16.msra.mxu2 %v3616_v49  ;;  %2418 = vmatpush.bf16.msra.mxu0 %v3328_v57  ;;  %v4709_v49 = vld [vmem:[#allocation4 + $0x474] sm:$0xf0] }
 0x122   :  { %2458 = vmatpush.bf16.msra.mxu3 %v3744_v53  ;;  %2432 = vmatpush.bf16.msra.mxu1 %v3456_v58  ;;  %v4304_v53 = vor.u32 %v4813_v46, %v4303_v45  ;;  %v3888_v57 = vor.u32 %v4709_v49, %v3887_v48  ;;  %v4287_v58 = vld [vmem:[#allocation4 + $0x788] sm:$0xf]  ;;  %v4797_v41 = vld [vmem:[#allocation4 + $0x734] sm:$0xf0]  ;;  %v4591_v45 = vld [vmem:[#allocation4 + $0xcc] sm:$0xf] }
 0x123   :  { %v4288_v6 = vor.u32 %v4809_v59, %v4287_v58  ;;  %v3425_v48 = vld [vmem:[#allocation4 + $0xd8] sm:$0xf0]  ;;  %v4623_v49 = vld [vmem:[#allocation4 + $0x1cc] sm:$0xf]  ;;  %v4793_v56 = vld [vmem:[#allocation4 + $0x714] sm:$0xf0] }
 0x124   :  { %2419 = vmatmul.bf16.vlgmr.msra.gmra.mxu0 %v5070_v26  ;;  %v3697_v58 = vld [vmem:[#allocation4 + $0x2f8] sm:$0xf0]  ;;  %v3428_v59 = vor.u32 %v4591_v45, %v3425_v48 }
 0x125   :  { %2467 = vmatpush.bf16.msrb.mxu0 %v3952_v63  ;;  %2445 = vmatpush.bf16.msra.mxu2 %v3600_v4  ;;  %v3871_v63 = vld [vmem:[#allocation4 + $0x448] sm:$0xf]  ;;  %v3361_v45 = vld [vmem:[#allocation4 + $0x58] sm:$0xf0] }
 0x126   :  { %2481 = vmatpush.bf16.msrb.mxu1 %v4080_v1  ;;  %2459 = vmatpush.bf16.msra.mxu3 %v3728_v8  ;;  %v4705_v1 = vld [vmem:[#allocation4 + $0x454] sm:$0xf0]  ;;  %v3999_v4 = vld [vmem:[#allocation4 + $0x548] sm:$0xf]  ;;  %v3489_v48 = vld [vmem:[#allocation4 + $0x158] sm:$0xf0] }
 0x127   :  { %2433 = vmatmul.bf16.vlgmr.msra.gmra.mxu1 %v5072_v31  ;;  %v4773_v8 = vld [vmem:[#allocation4 + $0x674] sm:$0xf0]  ;;  %v3872_v9 = vor.u32 %v4705_v1, %v3871_v63  ;;  %v4000_v12 = vor.u32 %v4737_v5, %v3999_v4  ;;  %v3825_v63 = vld [vmem:[#allocation4 + $0x3f8] sm:$0xf0]  ;;  %v4587_v4 = vld [vmem:[#allocation4 + $0xac] sm:$0xf] }
 0x128   :  { %v3409_v5 = vld [vmem:[#allocation4 + $0xb8] sm:$0xf0] }
 0x129   :  { %2468 = vmatpush.bf16.msrb.mxu0 %v3936_v15  ;;  %2446 = vmatpush.bf16.msra.mxu2 %v3584_v19  ;;  %v4144_v15 = vor.u32 %v4773_v8, %v4143_v7  ;;  %v4127_v19 = vld [vmem:[#allocation4 + $0x648] sm:$0xf]  ;;  %v4619_v8 = vld [vmem:[#allocation4 + $0x1ac] sm:$0xf]  ;;  %v3412_v13 = vor.u32 %v4587_v4, %v3409_v5  ;;  %v3617_v5 = vld [vmem:[#allocation4 + $0x258] sm:$0xf0] }
 0x12a   :  { %2482 = vmatpush.bf16.msrb.mxu1 %v4064_v16  ;;  %2460 = vmatpush.bf16.msra.mxu3 %v3712_v22  ;;  %v3983_v16 = vld [vmem:[#allocation4 + $0x528] sm:$0xf]  ;;  %v4639_v4 = vld [vmem:[#allocation4 + $0x24c] sm:$0xf] }
 0x12b   :  { %v4255_v22 = vld [vmem:[#allocation4 + $0x748] sm:$0xf]  ;;  %v3984_v2 = vor.u32 %v4733_v17, %v3983_v16  ;;  %v4583_v17 = vld [vmem:[#allocation4 + $0x8c] sm:$0xf] }
 0x12c   :  { %2447 = vmatmul.bf16.vlgmr.msra.gmra.mxu2 %v5076_v54 }
 0x12d   :  { %2495 = vmatpush.bf16.msrb.mxu2 %v4208_v24  ;;  %2469 = vmatpush.bf16.msrb.mxu0 %v3920_v32  ;;  %v4801_v24 = vld [vmem:[#allocation4 + $0x754] sm:$0xf0]  ;;  %v4128_v32 = vor.u32 %v4769_v20, %v4127_v19  ;;  %v4615_v20 = vld [vmem:[#allocation4 + $0x18c] sm:$0xf] }
 0x12e   :  { %2509 = vmatpush.bf16.msrb.mxu3 %v4336_v28  ;;  %2483 = vmatpush.bf16.msrb.mxu1 %v4048_v35  ;;  %v4697_v28 = vld [vmem:[#allocation4 + $0x414] sm:$0xf0]  ;;  %v4627_v35 = vld [vmem:[#allocation4 + $0x1ec] sm:$0xf]  ;;  %v4256_v36 = vor.u32 %v4801_v24, %v4255_v22 }
 0x12f   :  { %2461 = vmatmul.bf16.vlgmr.msra.gmra.mxu3 %v5078_v60  ;;  %v3840_v40 = vor.u32 %v4697_v28, %v3839_v25  ;;  %v3572_v46 = vor.u32 %v4627_v35, %v3569_v37  ;;  %v4651_v24 = vld [vmem:[#allocation4 + $0x2ac] sm:$0xf]  ;;  %v3665_v25 = vld [vmem:[#allocation4 + $0x2b8] sm:$0xf0] }
 0x130   :  { %v4683_v28 = vld [vmem:[#allocation4 + $0x3ac] sm:$0xf] }
 0x131   :  { %2496 = vmatpush.bf16.msrb.mxu2 %v4192_v38  ;;  %2470 = vmatpush.bf16.msrb.mxu0 %v3904_v44  ;;  %v4111_v38 = vld [vmem:[#allocation4 + $0x628] sm:$0xf]  ;;  %v3444_v44 = vor.u32 %v4595_v33, %v3441_v34  ;;  %v3377_v33 = vld [vmem:[#allocation4 + $0x78] sm:$0xf0]  ;;  %v3668_v34 = vor.u32 %v4651_v24, %v3665_v25  ;;  %v4611_v35 = vld [vmem:[#allocation4 + $0x16c] sm:$0xf]  ;;  %v3796_v37 = vor.u32 %v4683_v28, %v3793_v29 }
 0x132   :  { %2510 = vmatpush.bf16.msrb.mxu3 %v4320_v42  ;;  %2484 = vmatpush.bf16.msrb.mxu1 %v4032_v47  ;;  %v4239_v42 = vld [vmem:[#allocation4 + $0x728] sm:$0xf]  ;;  %v4112_v47 = vor.u32 %v4765_v39, %v4111_v38  ;;  %v4647_v38 = vld [vmem:[#allocation4 + $0x28c] sm:$0xf]  ;;  %v3649_v39 = vld [vmem:[#allocation4 + $0x298] sm:$0xf0] }
 0x133   :  { %v4240_v51 = vor.u32 %v4797_v41, %v4239_v42  ;;  %v4679_v42 = vld [vmem:[#allocation4 + $0x38c] sm:$0xf]  ;;  %v3777_v41 = vld [vmem:[#allocation4 + $0x398] sm:$0xf0] }
 0x134   :  { %v4667_v25 = vld [vmem:[#allocation4 + $0x32c] sm:$0xf] }
 0x135   :  { %2497 = vmatpush.bf16.msrb.mxu2 %v4176_v50  ;;  %2471 = vmatpush.bf16.msrb.mxu0 %v3888_v57  ;;  %v3553_v50 = vld [vmem:[#allocation4 + $0x1d8] sm:$0xf0]  ;;  %v4659_v57 = vld [vmem:[#allocation4 + $0x2ec] sm:$0xf] }
 0x136   :  { %2511 = vmatpush.bf16.msrb.mxu3 %v4304_v53  ;;  %2485 = vmatpush.bf16.msrb.mxu1 %v4016_v61  ;;  %v4761_v53 = vld [vmem:[#allocation4 + $0x614] sm:$0xf0]  ;;  %v4691_v61 = vld [vmem:[#allocation4 + $0x3ec] sm:$0xf]  ;;  %v3556_v1 = vor.u32 %v4623_v49, %v3553_v50  ;;  %v3700_v7 = vor.u32 %v4659_v57, %v3697_v58  ;;  %v3780_v49 = vor.u32 %v4679_v42, %v3777_v41  ;;  %v3345_v58 = vld [vmem:[#allocation4 + $0x38] sm:$0xf0] }
 0x137   :  { %v3828_v10 = vor.u32 %v4691_v61, %v3825_v63  ;;  %v4643_v50 = vld [vmem:[#allocation4 + $0x26c] sm:$0xf]  ;;  %v3713_v41 = vld [vmem:[#allocation4 + $0x318] sm:$0xf0] }
 0x138   :  { %v4571_v57 = vld [vmem:[#allocation4 + $0x2c] sm:$0xf] }
 0x139   :  { %2498 = vmatpush.bf16.msrb.mxu2 %v4160_v3  ;;  %2472 = vmatpush.bf16.msrb.mxu0 %v3872_v9  ;;  %v4096_v3 = vor.u32 %v4761_v53, %v4095_v52  ;;  %v3537_v9 = vld [vmem:[#allocation4 + $0x1b8] sm:$0xf0]  ;;  %v4675_v53 = vld [vmem:[#allocation4 + $0x36c] sm:$0xf] }
 0x13a   :  { %2512 = vmatpush.bf16.msrb.mxu3 %v4288_v6  ;;  %2486 = vmatpush.bf16.msrb.mxu1 %v4000_v12  ;;  %v4224_v6 = vor.u32 %v4793_v56, %v4223_v55  ;;  %v3681_v12 = vld [vmem:[#allocation4 + $0x2d8] sm:$0xf0]  ;;  %v3540_v16 = vor.u32 %v4619_v8, %v3537_v9  ;;  %v4603_v63 = vld [vmem:[#allocation4 + $0x12c] sm:$0xf] }
 0x13b   :  { %v3684_v19 = vor.u32 %v4655_v11, %v3681_v12  ;;  %v3761_v55 = vld [vmem:[#allocation4 + $0x378] sm:$0xf0]  ;;  %v4671_v8 = vld [vmem:[#allocation4 + $0x34c] sm:$0xf] }
 0x13c   :  { %v3745_v9 = vld [vmem:[#allocation4 + $0x358] sm:$0xf0] }
 0x13d   :  { %2499 = vmatpush.bf16.msrb.mxu2 %v4144_v15  ;;  %2473 = vmatpush.bf16.msrb.mxu0 %v3856_v21  ;;  %v3809_v15 = vld [vmem:[#allocation4 + $0x3d8] sm:$0xf0] }
 0x13e   :  { %2513 = vmatpush.bf16.msrb.mxu3 %v4272_v18  ;;  %2487 = vmatpush.bf16.msrb.mxu1 %v3984_v2  ;;  %v3393_v18 = vld [vmem:[#allocation4 + $0x98] sm:$0xf0]  ;;  %v3812_v22 = vor.u32 %v4687_v14, %v3809_v15  ;;  %v3620_v15 = vor.u32 %v4639_v4, %v3617_v5  ;;  %v4815_v5 = vld [vmem:[#allocation4 + $0x7cc] sm:$0xf] }
 0x13f   :  { %v3521_v21 = vld [vmem:[#allocation4 + $0x198] sm:$0xf0]  ;;  %v3396_v2 = vor.u32 %v4583_v17, %v3393_v18  ;;  %v4755_v18 = vld [vmem:[#allocation4 + $0x5ec] sm:$0xf] }
 0x140   :  { %v3524_v30 = vor.u32 %v4615_v20, %v3521_v21  ;;  %v3329_v12 = vld [vmem:[#allocation4 + $0x18] sm:$0xf0]  ;;  %v4635_v21 = vld [vmem:[#allocation4 + $0x22c] sm:$0xf] }
 0x141   :  { %2500 = vmatpush.bf16.msrb.mxu2 %v4128_v32  ;;  %2474 = vmatpush.bf16.msrb.mxu0 %v3840_v40  ;;  %v4579_v32 = vld [vmem:[#allocation4 + $0x6c] sm:$0xf]  ;;  %v3457_v14 = vld [vmem:[#allocation4 + $0x118] sm:$0xf0] }
 0x142   :  { %2514 = vmatpush.bf16.msrb.mxu3 %v4256_v36  ;;  %2488 = vmatpush.bf16.msrb.mxu1 %v3968_v43  ;;  %v3505_v36 = vld [vmem:[#allocation4 + $0x178] sm:$0xf0]  ;;  %v3380_v40 = vor.u32 %v4579_v32, %v3377_v33 }
 0x143   :  { %v3508_v43 = vor.u32 %v4611_v35, %v3505_v36  ;;  %v3953_v17 = vld [vmem:[#allocation4 + $0x4f8] sm:$0xf0]  ;;  %v4751_v35 = vld [vmem:[#allocation4 + $0x5cc] sm:$0xf] }
 0x144   :  { %2475 = vmatmul.bf16.vlgmr.msrb.gmra.mxu0 %v5086_v23  ;;  %v4081_v20 = vld [vmem:[#allocation4 + $0x5f8] sm:$0xf0] }
 0x145   :  { %2523 = vmatpush.bf16.msra.mxu0 %v3444_v44  ;;  %2501 = vmatpush.bf16.msrb.mxu2 %v4112_v47  ;;  %v4575_v44 = vld [vmem:[#allocation4 + $0x4c] sm:$0xf]  ;;  %v4084_v32 = vor.u32 %v4755_v18, %v4081_v20  ;;  %v4065_v36 = vld [vmem:[#allocation4 + $0x5d8] sm:$0xf0] }
 0x146   :  { %2537 = vmatpush.bf16.msra.mxu1 %v3572_v46  ;;  %2515 = vmatpush.bf16.msrb.mxu3 %v4240_v51  ;;  %v3652_v46 = vor.u32 %v4647_v38, %v3649_v39  ;;  %v4607_v47 = vld [vmem:[#allocation4 + $0x14c] sm:$0xf]  ;;  %v3633_v51 = vld [vmem:[#allocation4 + $0x278] sm:$0xf0]  ;;  %v3364_v52 = vor.u32 %v4575_v44, %v3361_v45 }
 0x147   :  { %2489 = vmatmul.bf16.vlgmr.msrb.gmra.mxu1 %v5088_v27  ;;  %v3492_v56 = vor.u32 %v4607_v47, %v3489_v48  ;;  %v3636_v61 = vor.u32 %v4643_v50, %v3633_v51  ;;  %v4631_v38 = vld [vmem:[#allocation4 + $0x20c] sm:$0xf]  ;;  %v3585_v39 = vld [vmem:[#allocation4 + $0x218] sm:$0xf0] }
 0x148   :  { %v4209_v44 = vld [vmem:[#allocation4 + $0x6f8] sm:$0xf0]  ;;  %v3588_v50 = vor.u32 %v4631_v38, %v3585_v39  ;;  %v4715_v51 = vld [vmem:[#allocation4 + $0x4ac] sm:$0xf] }
 0x149   :  { %2524 = vmatpush.bf16.msra.mxu0 %v3428_v59  ;;  %2502 = vmatpush.bf16.msrb.mxu2 %v4096_v3  ;;  %v5114_v59 = vpop.f32.mrf.mxu0  ;;  %v3764_v3 = vor.u32 %v4675_v53, %v3761_v55  ;;  %v4337_v47 = vld [vmem:[#allocation4 + $0x7f8] sm:$0xf0]  ;;  %v4735_v39 = vld [vmem:[#allocation4 + $0x54c] sm:$0xf] }
 0x14a   :  { %2538 = vmatpush.bf16.msra.mxu1 %v3556_v1  ;;  %2516 = vmatpush.bf16.msrb.mxu3 %v4224_v6  ;;  %v3473_v1 = vld [vmem:[#allocation4 + $0x138] sm:$0xf0]  ;;  %v5116_v6 = vpop.f32.mrf.mxu1 }
 0x14b   :  { %v3476_v11 = vor.u32 %v4603_v63, %v3473_v1  ;;  %v4783_v1 = vld [vmem:[#allocation4 + $0x6cc] sm:$0xf]  ;;  %v4305_v18 = vld [vmem:[#allocation4 + $0x7b8] sm:$0xf0] }
 0x14c   :  { %2503 = vmatmul.bf16.vlgmr.msrb.gmra.mxu2 %v5092_v62 }
 0x14d   :  { %2551 = vmatpush.bf16.msra.mxu2 %v3700_v7  ;;  %2525 = vmatpush.bf16.msra.mxu0 %v3412_v13  ;;  %v3348_v7 = vor.u32 %v4571_v57, %v3345_v58  ;;  %v4599_v13 = vld [vmem:[#allocation4 + $0x10c] sm:$0xf]  ;;  %v4049_v58 = vld [vmem:[#allocation4 + $0x5b8] sm:$0xf0] }
 0x14e   :  { %2565 = vmatpush.bf16.msra.mxu3 %v3828_v10  ;;  %2539 = vmatpush.bf16.msra.mxu1 %v3540_v16  ;;  %v4567_v10 = vld [vmem:[#allocation4 + $0xc] sm:$0xf]  ;;  %v3460_v28 = vor.u32 %v4599_v13, %v3457_v14 }
 0x14f   :  { %2517 = vmatmul.bf16.vlgmr.msrb.gmra.mxu3 %v5094_v0  ;;  %v4723_v16 = vld [vmem:[#allocation4 + $0x4ec] sm:$0xf]  ;;  %v3332_v24 = vor.u32 %v4567_v10, %v3329_v12  ;;  %v5122_v53 = vpop.f32.mrf.mxu2  ;;  %v4033_v12 = vld [vmem:[#allocation4 + $0x598] sm:$0xf0] }
 0x150   :  { %v3956_v29 = vor.u32 %v4723_v16, %v3953_v17  ;;  %v4747_v57 = vld [vmem:[#allocation4 + $0x5ac] sm:$0xf] }
 0x151   :  { %2552 = vmatpush.bf16.msra.mxu2 %v3684_v19  ;;  %2526 = vmatpush.bf16.msra.mxu0 %v3396_v2  ;;  %v3748_v19 = vor.u32 %v4671_v8, %v3745_v9  ;;  %v3729_v2 = vld [vmem:[#allocation4 + $0x338] sm:$0xf0]  ;;  %v5118_v42 = vpop.f32.mrf.mxu0  ;;  %v4052_v8 = vor.u32 %v4747_v57, %v4049_v58  ;;  %v4711_v9 = vld [vmem:[#allocation4 + $0x48c] sm:$0xf] }
 0x152   :  { %2566 = vmatpush.bf16.msra.mxu3 %v3812_v22  ;;  %2540 = vmatpush.bf16.msra.mxu1 %v3524_v30  ;;  %v3601_v22 = vld [vmem:[#allocation4 + $0x238] sm:$0xf0]  ;;  %v4719_v30 = vld [vmem:[#allocation4 + $0x4cc] sm:$0xf]  ;;  %v5120_v48 = vpop.f32.mrf.mxu1 }
 0x153   :  { %v3604_v33 = vor.u32 %v4635_v21, %v3601_v22  ;;  %v4779_v14 = vld [vmem:[#allocation4 + $0x6ac] sm:$0xf]  ;;  %v3889_v22 = vld [vmem:[#allocation4 + $0x478] sm:$0xf0] }
 0x154   :  { %v4811_v17 = vld [vmem:[#allocation4 + $0x7ac] sm:$0xf]  ;;  %v3985_v57 = vld [vmem:[#allocation4 + $0x538] sm:$0xf0] }
 0x155   :  { %2553 = vmatpush.bf16.msra.mxu2 %v3668_v34  ;;  %2527 = vmatpush.bf16.msra.mxu0 %v3380_v40  ;;  %v3937_v34 = vld [vmem:[#allocation4 + $0x4d8] sm:$0xf0]  ;;  %v4663_v40 = vld [vmem:[#allocation4 + $0x30c] sm:$0xf] }
 0x156   :  { %2567 = vmatpush.bf16.msra.mxu3 %v3796_v37  ;;  %2541 = vmatpush.bf16.msra.mxu1 %v3508_v43  ;;  %v3732_v37 = vor.u32 %v4667_v25, %v3729_v2  ;;  %v4787_v43 = vld [vmem:[#allocation4 + $0x6ec] sm:$0xf]  ;;  %v3940_v45 = vor.u32 %v4719_v30, %v3937_v34  ;;  %v3716_v55 = vor.u32 %v4663_v40, %v3713_v41  ;;  %v4017_v2 = vld [vmem:[#allocation4 + $0x578] sm:$0xf0] }
 0x157   :  { %v4707_v21 = vld [vmem:[#allocation4 + $0x46c] sm:$0xf]  ;;  %v5134_v30 = vpop.f32.mrf.mxu2  ;;  %v4001_v40 = vld [vmem:[#allocation4 + $0x558] sm:$0xf0] }
 0x158   :  { %v4739_v25 = vld [vmem:[#allocation4 + $0x56c] sm:$0xf] }
 0x159   :  { %2554 = vmatpush.bf16.msra.mxu2 %v3652_v46  ;;  %2528 = vmatpush.bf16.msra.mxu0 %v3364_v52  ;;  %v4819_v46 = vld [vmem:[#allocation4 + $0x7ec] sm:$0xf]  ;;  %v3921_v52 = vld [vmem:[#allocation4 + $0x4b8] sm:$0xf0] }
 0x15a   :  { %2568 = vmatpush.bf16.msra.mxu3 %v3780_v49  ;;  %2542 = vmatpush.bf16.msra.mxu1 %v3492_v56  ;;  %v4068_v49 = vor.u32 %v4751_v35, %v4065_v36  ;;  %v4212_v56 = vor.u32 %v4787_v43, %v4209_v44  ;;  %v4340_v63 = vor.u32 %v4819_v46, %v4337_v47  ;;  %v4703_v36 = vld [vmem:[#allocation4 + $0x44c] sm:$0xf] }
 0x15b   :  { %v3924_v4 = vor.u32 %v4715_v51, %v3921_v52  ;;  %v4020_v35 = vor.u32 %v4739_v25, %v4017_v2  ;;  %v4771_v44 = vld [vmem:[#allocation4 + $0x66c] sm:$0xf]  ;;  %v3857_v52 = vld [vmem:[#allocation4 + $0x438] sm:$0xf0] }
 0x15c   :  { %v4803_v47 = vld [vmem:[#allocation4 + $0x76c] sm:$0xf]  ;;  %v4829_v2 = vld [vmem:[#allocation6 + $0x38] sm:$0xff] }
 0x15d   :  { %2555 = vmatpush.bf16.msra.mxu2 %v3636_v61  ;;  %2529 = vmatpush.bf16.msra.mxu0 %v3348_v7  ;;  %v5125_v61 = vpop.f32.mrf.mxu3  ;;  %v4321_v7 = vld [vmem:[#allocation4 + $0x7d8] sm:$0xf0]  ;;  %v4699_v51 = vld [vmem:[#allocation4 + $0x42c] sm:$0xf] }
 0x15e   :  { %2569 = vmatpush.bf16.msra.mxu3 %v3764_v3  ;;  %2543 = vmatpush.bf16.msra.mxu1 %v3476_v11  ;;  %v4193_v3 = vld [vmem:[#allocation4 + $0x6d8] sm:$0xf0]  ;;  %v4743_v11 = vld [vmem:[#allocation4 + $0x58c] sm:$0xf] }
 0x15f   :  { %v4196_v10 = vor.u32 %v4783_v1, %v4193_v3  ;;  %v4036_v20 = vor.u32 %v4743_v11, %v4033_v12  ;;  %v4767_v1 = vld [vmem:[#allocation4 + $0x64c] sm:$0xf]  ;;  %v4129_v3 = vld [vmem:[#allocation4 + $0x658] sm:$0xf0] }
 0x160   :  { %v3841_v11 = vld [vmem:[#allocation4 + $0x418] sm:$0xf0]  ;;  %v4132_v12 = vor.u32 %v4767_v1, %v4129_v3 }
 0x161   :  { %2556 = vmatpush.bf16.msra.mxu2 %v3620_v15  ;;  %2530 = vmatpush.bf16.msra.mxu0 %v3332_v24  ;;  %v5128_v13 = vpop.f32.mrf.mxu0  ;;  %v4177_v15 = vld [vmem:[#allocation4 + $0x6b8] sm:$0xf0] }
 0x162   :  { %2570 = vmatpush.bf16.msra.mxu3 %v3748_v19  ;;  %2544 = vmatpush.bf16.msra.mxu1 %v3460_v28  ;;  %v5132_v19 = vpop.f32.mrf.mxu1  ;;  %v4180_v24 = vor.u32 %v4779_v14, %v4177_v15  ;;  %v4308_v28 = vor.u32 %v4811_v17, %v4305_v18  ;;  %v3969_v14 = vld [vmem:[#allocation4 + $0x518] sm:$0xf0]  ;;  %v5149_v15 = vld [vmem:[%s5189_s4] sm:$0xf]  ;;  %v4763_v18 = vld [vmem:[#allocation4 + $0x62c] sm:$0xf] }
 0x164   :  { %2531 = vmatmul.bf16.vlgmr.msra.gmra.mxu0 %v5070_v26  ;;  %v3905_v26 = vld [vmem:[#allocation4 + $0x498] sm:$0xf0] }
 0x165   :  { %2579 = vmatpush.bf16.msrb.mxu0 %v3956_v29  ;;  %2557 = vmatpush.bf16.msra.mxu2 %v3604_v33  ;;  %v3908_v16 = vor.u32 %v4711_v9, %v3905_v26  ;;  %v4775_v29 = vld [vmem:[#allocation4 + $0x68c] sm:$0xf]  ;;  %v5136_v34 = vpop.f32.mrf.mxu3 }
 0x166   :  { %2593 = vmatpush.bf16.msrb.mxu1 %v4084_v32  ;;  %2571 = vmatpush.bf16.msra.mxu3 %v3732_v37  ;;  %v3892_v32 = vor.u32 %v4707_v21, %v3889_v22  ;;  %v4807_v33 = vld [vmem:[#allocation4 + $0x78c] sm:$0xf]  ;;  %v3873_v37 = vld [vmem:[#allocation4 + $0x458] sm:$0xf0] }
 0x167   :  { %2545 = vmatmul.bf16.vlgmr.msra.gmra.mxu1 %v5072_v31  ;;  %v4324_v31 = vor.u32 %v4815_v5, %v4321_v7  ;;  %v3876_v46 = vor.u32 %v4703_v36, %v3873_v37  ;;  %v3860_v5 = vor.u32 %v4699_v51, %v3857_v52  ;;  %v4799_v7 = vld [vmem:[#allocation4 + $0x74c] sm:$0xf] }
 0x168   :  { %v4795_v22 = vld [vmem:[#allocation4 + $0x72c] sm:$0xf] }
 0x169   :  { %2580 = vmatpush.bf16.msrb.mxu0 %v3940_v45  ;;  %2558 = vmatpush.bf16.msra.mxu2 %v3588_v50  ;;  %v5138_v41 = vpop.f32.mrf.mxu0  ;;  %v4145_v45 = vld [vmem:[#allocation4 + $0x678] sm:$0xf0]  ;;  %v4004_v50 = vor.u32 %v4735_v39, %v4001_v40  ;;  %v4791_v37 = vld [vmem:[#allocation4 + $0x70c] sm:$0xf] }
 0x16a   :  { %2594 = vmatpush.bf16.msrb.mxu1 %v4068_v49  ;;  %2572 = vmatpush.bf16.msra.mxu3 %v3716_v55  ;;  %v4273_v49 = vld [vmem:[#allocation4 + $0x778] sm:$0xf0]  ;;  %v4148_v55 = vor.u32 %v4771_v44, %v4145_v45  ;;  %v5140_v58 = vpop.f32.mrf.mxu1 }
 0x16c   :  { %2559 = vmatmul.bf16.vlgmr.msra.gmra.mxu2 %v5076_v54  ;;  %v4161_v54 = vld [vmem:[#allocation4 + $0x698] sm:$0xf0] }
 0x16d   :  { %2607 = vmatpush.bf16.msrb.mxu2 %v4212_v56  ;;  %2581 = vmatpush.bf16.msrb.mxu0 %v3924_v4  ;;  %v4164_v38 = vor.u32 %v4775_v29, %v4161_v54  ;;  %v4731_v56 = vld [vmem:[#allocation4 + $0x52c] sm:$0xf]  ;;  %v4837_v54 = vld [vmem:[#allocation6 + $0x78] sm:$0xff] }
 0x16e   :  { %2621 = vmatpush.bf16.msrb.mxu3 %v4340_v63  ;;  %2595 = vmatpush.bf16.msrb.mxu1 %v4052_v8  ;;  %v4276_v63 = vor.u32 %v4803_v47, %v4273_v49  ;;  %v5142_v4 = vpop.f32.mrf.mxu2  ;;  %v4257_v8 = vld [vmem:[#allocation4 + $0x758] sm:$0xf0]  ;;  %v5144_v9 = vpop.f32.mrf.mxu3  ;;  %v3988_v26 = vor.u32 %v4731_v56, %v3985_v57 }
 0x16f   :  { %2573 = vmatmul.bf16.vlgmr.msra.gmra.mxu3 %v5078_v60  ;;  %v4289_v60 = vld [vmem:[#allocation4 + $0x798] sm:$0xf0]  ;;  %v4260_v17 = vor.u32 %v4799_v7, %v4257_v8 }
 0x170   :  { %v4292_v43 = vor.u32 %v4807_v33, %v4289_v60  ;;  %v4759_v33 = vld [vmem:[#allocation4 + $0x60c] sm:$0xf]  ;;  %v4097_v60 = vld [vmem:[#allocation4 + $0x618] sm:$0xf0] }
 0x171   :  { %2608 = vmatpush.bf16.msrb.mxu2 %v4196_v10  ;;  %2582 = vmatpush.bf16.msrb.mxu0 %v3908_v16  ;;  %v4695_v10 = vld [vmem:[#allocation4 + $0x40c] sm:$0xf]  ;;  %v2308_v16 = vpop.f32.mrf.mxu0  ;;  %v4100_v45 = vor.u32 %v4759_v33, %v4097_v60 }
 0x172   :  { %2622 = vmatpush.bf16.msrb.mxu3 %v4324_v31  ;;  %2596 = vmatpush.bf16.msrb.mxu1 %v4036_v20  ;;  %v4727_v31 = vld [vmem:[#allocation4 + $0x50c] sm:$0xf]  ;;  %v4113_v20 = vld [vmem:[#allocation4 + $0x638] sm:$0xf0]  ;;  %v3844_v21 = vor.u32 %v4695_v10, %v3841_v11  ;;  %v2322_v39 = vpop.f32.mrf.mxu1 }
 0x173   :  { %v3972_v25 = vor.u32 %v4727_v31, %v3969_v14  ;;  %v4116_v29 = vor.u32 %v4763_v18, %v4113_v20  ;;  %v4832_v14 = vld [vmem:[#allocation6 + $0x50] sm:$0xff]  ;;  %v4823_v20 = vld [vmem:[#allocation6 + $0x8] sm:$0xff] }
 0x175   :  { %2609 = vmatpush.bf16.msrb.mxu2 %v4180_v24  ;;  %2583 = vmatpush.bf16.msrb.mxu0 %v3892_v32  ;;  %v4241_v24 = vld [vmem:[#allocation4 + $0x738] sm:$0xf0] }
 0x176   :  { %2623 = vmatpush.bf16.msrb.mxu3 %v4308_v28  ;;  %2597 = vmatpush.bf16.msrb.mxu1 %v4020_v35  ;;  %v899_v28 = vperm.slane %v5149_v15, 0  ;;  %v4244_v32 = vor.u32 %v4795_v22, %v4241_v24  ;;  %v2282_v36 = vpop.f32.mrf.mxu2  ;;  %v2296_v40 = vpop.f32.mrf.mxu3 }
 0x178   :  { %v2199_v35 = vadd.f32 %v5118_v42, %v899_v28  ;;  %v2197_v44 = vadd.f32 %v5114_v59, %v899_v28  ;;  %v900_v59 = vperm.slane %v5149_v15, 1 }
 0x179   :  { %2610 = vmatpush.bf16.msrb.mxu2 %v4164_v38  ;;  %2584 = vmatpush.bf16.msrb.mxu0 %v3876_v46  ;;  %v4225_v38 = vld [vmem:[#allocation4 + $0x718] sm:$0xf0]  ;;  %v4836_v46 = vld [vmem:[#allocation6 + $0x70] sm:$0xff]  ;;  %v2310_v49 = vpop.f32.mrf.mxu0 }
 0x17a   :  { %2624 = vmatpush.bf16.msrb.mxu3 %v4292_v43  ;;  %2598 = vmatpush.bf16.msrb.mxu1 %v4004_v50  ;;  %v4828_v43 = vld [vmem:[#allocation6 + $0x30] sm:$0xff]  ;;  %v4228_v47 = vor.u32 %v4791_v37, %v4225_v38  ;;  %v2213_v42 = vadd.f32 %v5120_v48, %v2199_v35  ;;  %v4827_v50 = vld [vmem:[#allocation6 + $0x28] sm:$0xff]  ;;  %v2211_v51 = vadd.f32 %v5116_v6, %v2197_v44  ;;  %v4834_v6 = vld [vmem:[#allocation6 + $0x60] sm:$0xff] }
 0x17c   :  { %v2227_v52 = vadd.f32 %v5134_v30, %v2213_v42  ;;  %v2324_v30 = vpop.f32.mrf.mxu1  ;;  %v4844_v42 = vld [vmem:[#allocation6 + $0xb0] sm:$0xff] }
 0x17d   :  { %2611 = vmatpush.bf16.msrb.mxu2 %v4148_v55  ;;  %2585 = vmatpush.bf16.msrb.mxu0 %v3860_v5  ;;  %v4835_v55 = vld [vmem:[#allocation6 + $0x68] sm:$0xff] }
 0x17e   :  { %2625 = vmatpush.bf16.msrb.mxu3 %v4276_v63  ;;  %2599 = vmatpush.bf16.msrb.mxu1 %v3988_v26  ;;  %v2336_v56 = vpop.f32.mrf.mxu2  ;;  %v2350_v57 = vpop.f32.mrf.mxu3  ;;  %v2241_v48 = vadd.f32 %v5136_v34, %v2227_v52  ;;  %v2309_v63 = vadd.f32 %v2308_v16, %v900_v59  ;;  %v4833_v26 = vld [vmem:[#allocation6 + $0x58] sm:$0xff] }
 0x17f   :  { %v4841_v52 = vld [vmem:[#allocation6 + $0x98] sm:$0xff] }
 0x180   :  { %v2255_v3 = vadd.f32 %v5138_v41, %v2241_v48  ;;  %v2323_v7 = vadd.f32 %v2322_v39, %v2309_v63  ;;  %v901_v63 = vperm.slane %v5149_v15, 2 }
 0x181   :  { %2612 = vmatpush.bf16.msrb.mxu2 %v4132_v12  ;;  %2586 = vmatpush.bf16.msrb.mxu0 %v3844_v21  ;;  %v2364_v8 = vpop.f32.mrf.mxu0  ;;  %v4824_v12 = vld [vmem:[#allocation6 + $0x10] sm:$0xff] }
 0x182   :  { %2626 = vmatpush.bf16.msrb.mxu3 %v4260_v17  ;;  %2600 = vmatpush.bf16.msrb.mxu1 %v3972_v25  ;;  %v2269_v34 = vadd.f32 %v5140_v58, %v2255_v3  ;;  %v2337_v10 = vadd.f32 %v2336_v56, %v2323_v7  ;;  %v4831_v58 = vld [vmem:[#allocation6 + $0x48] sm:$0xff] }
 0x184   :  { %2587 = vmatmul.bf16.vlgmr.msrb.gmra.mxu0 %v5086_v23  ;;  %v2225_v23 = vadd.f32 %v5122_v53, %v2211_v51  ;;  %v4825_v53 = vld [vmem:[#allocation6 + $0x18] sm:$0xff]  ;;  %v2283_v31 = vadd.f32 %v2282_v36, %v2269_v34  ;;  %v2351_v16 = vadd.f32 %v2350_v57, %v2337_v10  ;;  %v2378_v18 = vpop.f32.mrf.mxu1  ;;  %v4842_v51 = vld [vmem:[#allocation6 + $0xa0] sm:$0xff] }
 0x185   :  { %2907 = vmatpush.bf16.msra.mxu0 %v4829_v2  ;;  %2613 = vmatpush.bf16.msrb.mxu2 %v4116_v29  ;;  %v4822_v29 = vld [vmem:[#allocation6] sm:$0xff] }
 0x186   :  { %2921 = vmatpush.bf16.msra.mxu1 %v4837_v54  ;;  %2627 = vmatpush.bf16.msrb.mxu3 %v4244_v32  ;;  %v2239_v1 = vadd.f32 %v5125_v61, %v2225_v23  ;;  %v2352_v11 = vpop.f32.mrf.mxu3  ;;  %v2297_v21 = vadd.f32 %v2296_v40, %v2283_v31  ;;  %v2365_v24 = vadd.f32 %v2364_v8, %v2351_v16  ;;  %v4839_v23 = vld [vmem:[#allocation6 + $0x88] sm:$0xff]  ;;  %v4838_v57 = vld [vmem:[#allocation6 + $0x80] sm:$0xff] }
 0x187   :  { %2601 = vmatmul.bf16.vlgmr.msrb.gmra.mxu1 %v5088_v27  ;;  %v4826_v27 = vld [vmem:[#allocation6 + $0x20] sm:$0xff] }
 0x188   :  { %v2253_v5 = vadd.f32 %v5128_v13, %v2239_v1  ;;  %v2639_v54 = vmax.f32 %v2297_v21, 0.0  ;;  %v2379_v33 = vadd.f32 %v2378_v18, %v2365_v24  ;;  %v4853_v21 = vld [vmem:[#allocation6 + $0xf8] sm:$0xff] }
 0x189   :  { %2908 = vmatpush.bf16.msra.mxu0 %v4828_v43  ;;  %2614 = vmatpush.bf16.msrb.mxu2 %v4100_v45  ;;  %v2366_v2 = vpop.f32.mrf.mxu0 }
 0x18a   :  { %2922 = vmatpush.bf16.msra.mxu1 %v4836_v46  ;;  %2628 = vmatpush.bf16.msrb.mxu3 %v4228_v47  ;;  %v2267_v61 = vadd.f32 %v5132_v19, %v2253_v5 }
 0x18c   :  { %2615 = vmatmul.bf16.vlgmr.msrb.gmra.mxu2 %v5092_v62  ;;  %v2311_v62 = vadd.f32 %v2310_v49, %v900_v59  ;;  %v2281_v13 = vadd.f32 %v5142_v4, %v2267_v61  ;;  %v4830_v4 = vld [vmem:[#allocation6 + $0x40] sm:$0xff]  ;;  %v2380_v37 = vpop.f32.mrf.mxu1 }
 0x18d   :  { %2909 = vmatpush.bf16.msra.mxu0 %v4827_v50  ;;  %2629 = vmatmul.bf16.vlgmr.msrb.gmra.mxu3 %v5094_v0  ;;  %v2338_v0 = vpop.f32.mrf.mxu2  ;;  %v4843_v50 = vld [vmem:[#allocation6 + $0xa8] sm:$0xff] }
 0x18e   :  { %2923 = vmatpush.bf16.msra.mxu1 %v4835_v55  ;;  %v2325_v41 = vadd.f32 %v2324_v30, %v2311_v62  ;;  %v2295_v22 = vadd.f32 %v5144_v9, %v2281_v13  ;;  %v4845_v9 = vld [vmem:[#allocation6 + $0xb8] sm:$0xff]  ;;  %v4840_v55 = vld [vmem:[#allocation6 + $0x90] sm:$0xff]  ;;  %2949 = vmatpush.bf16.msra.mxu3 %v4853_v21 }
 0x18f   :  { %2935 = vmatpush.bf16.msra.mxu2 %v4845_v9 }
 0x190   :  { %v2339_v17 = vadd.f32 %v2338_v0, %v2325_v41  ;;  %v2635_v32 = vmax.f32 %v2295_v22, 0.0 }
 0x191   :  { %2910 = vmatpush.bf16.msra.mxu0 %v4826_v27 }
 0x192   :  { %2924 = vmatpush.bf16.msra.mxu1 %v4834_v6  ;;  %v2353_v25 = vadd.f32 %v2352_v11, %v2339_v17  ;;  %v2406_v28 = vpop.f32.mrf.mxu3  ;;  %v2643_v35 = vpack.c.bf16 %v2639_v54, %v2635_v32  ;;  %v4851_v54 = vld [vmem:[#allocation6 + $0xe8] sm:$0xff]  ;;  %v4849_v32 = vld [vmem:[#allocation6 + $0xd8] sm:$0xff] }
 0x193   :  { %2936 = vmatpush.bf16.msra.mxu2 %v4844_v42 }
 0x194   :  { %v2367_v60 = vadd.f32 %v2366_v2, %v2353_v25 }
 0x195   :  { %2911 = vmatpush.bf16.msra.mxu0 %v4825_v53  ;;  %v2392_v19 = vpop.f32.mrf.mxu2 }
 0x196   :  { %2925 = vmatpush.bf16.msra.mxu1 %v4833_v26  ;;  %v2393_v36 = vadd.f32 %v2392_v19, %v2379_v33  ;;  %v2381_v38 = vadd.f32 %v2380_v37, %v2367_v60  ;;  %v4848_v60 = vld [vmem:[#allocation6 + $0xd0] sm:$0xff]  ;;  %v4846_v37 = vld [vmem:[#allocation6 + $0xc0] sm:$0xff] }
 0x197   :  { %2937 = vmatpush.bf16.msra.mxu2 %v4843_v50 }
 0x198   :  { %v2407_v40 = vadd.f32 %v2406_v28, %v2393_v36 }
 0x199   :  { %2912 = vmatpush.bf16.msra.mxu0 %v4824_v12 }
 0x19a   :  { %2926 = vmatpush.bf16.msra.mxu1 %v4832_v14  ;;  %v2408_v44 = vpop.f32.mrf.mxu3  ;;  %v2636_v46 = vmax.f32 %v2407_v40, 0.0 }
 0x19b   :  { %2938 = vmatpush.bf16.msra.mxu2 %v4842_v51 }
 0x19d   :  { %2913 = vmatpush.bf16.msra.mxu0 %v4823_v20  ;;  %v2394_v39 = vpop.f32.mrf.mxu2 }
 0x19e   :  { %2927 = vmatpush.bf16.msra.mxu1 %v4831_v58  ;;  %v2395_v43 = vadd.f32 %v2394_v39, %v2381_v38  ;;  %v902_v39 = vperm.slane %v5149_v15, 3 }
 0x19f   :  { %2939 = vmatpush.bf16.msra.mxu2 %v4841_v52 }
 0x1a0   :  { %v2409_v45 = vadd.f32 %v2408_v44, %v2395_v43 }
 0x1a1   :  { %2914 = vmatpush.bf16.msra.mxu0 %v4822_v29  ;;  %v2420_v59 = vpop.f32.mrf.mxu0  ;;  %v4852_v29 = vld [vmem:[#allocation6 + $0xf0] sm:$0xff] }
 0x1a2   :  { %2928 = vmatpush.bf16.msra.mxu1 %v4830_v4  ;;  %v2640_v47 = vmax.f32 %v2409_v45, 0.0  ;;  %v2421_v30 = vadd.f32 %v2420_v59, %v901_v63  ;;  %2950 = vmatpush.bf16.msra.mxu3 %v4852_v29  ;;  %v4850_v4 = vld [vmem:[#allocation6 + $0xe0] sm:$0xff] }
 0x1a3   :  { %2940 = vmatpush.bf16.msra.mxu2 %v4840_v55 }
 0x1a4   :  { %2915 = vmatmul.bf16.vlgmr.msra.gmra.mxu0 %v2643_v35  ;;  %v2644_v49 = vpack.c.bf16 %v2640_v47, %v2636_v46  ;;  %v2434_v56 = vpop.f32.mrf.mxu1  ;;  %v4847_v35 = vld [vmem:[#allocation6 + $0xc8] sm:$0xff] }
 0x1a5   :  { %v2435_v53 = vadd.f32 %v2434_v56, %v2421_v30 }
 0x1a6   :  { %2929 = vmatmul.bf16.vlgmr.msra.gmra.mxu1 %v2644_v49  ;;  %2951 = vmatpush.bf16.msra.mxu3 %v4851_v54 }
 0x1a7   :  { %2941 = vmatpush.bf16.msra.mxu2 %v4839_v23 }
 0x1a9   :  { %v2422_v27 = vpop.f32.mrf.mxu0 }
 0x1aa   :  { %v2423_v5 = vadd.f32 %v2422_v27, %v901_v63  ;;  %2952 = vmatpush.bf16.msra.mxu3 %v4850_v4 }
 0x1ab   :  { %2942 = vmatpush.bf16.msra.mxu2 %v4838_v57 }
 0x1ac   :  { %v2436_v1 = vpop.f32.mrf.mxu1 }
 0x1ad   :  { %v2437_v26 = vadd.f32 %v2436_v1, %v2423_v5 }
 0x1ae   :  { %2953 = vmatpush.bf16.msra.mxu3 %v4849_v32 }
 0x1af   :  { %v2448_v48 = vpop.f32.mrf.mxu2 }
 0x1b0   :  { %v2449_v62 = vadd.f32 %v2448_v48, %v2435_v53 }
 0x1b2   :  { %v2462_v6 = vpop.f32.mrf.mxu3  ;;  %2954 = vmatpush.bf16.msra.mxu3 %v4848_v60 }
 0x1b3   :  { %v2463_v10 = vadd.f32 %v2462_v6, %v2449_v62 }
 0x1b6   :  { %2955 = vmatpush.bf16.msra.mxu3 %v4847_v35 }
 0x1b7   :  { %v2450_v7 = vpop.f32.mrf.mxu2 }
 0x1b8   :  { %v2451_v0 = vadd.f32 %v2450_v7, %v2437_v26 }
 0x1ba   :  { %v2464_v8 = vpop.f32.mrf.mxu3  ;;  %2956 = vmatpush.bf16.msra.mxu3 %v4846_v37 }
 0x1bb   :  { %v2465_v31 = vadd.f32 %v2464_v8, %v2451_v0  ;;  %v4860_v0 = vld [vmem:[#allocation7 + $0x30] sm:$0xff] }
 0x1c1   :  { %v2476_v3 = vpop.f32.mrf.mxu0 }
 0x1c2   :  { %v2477_v11 = vadd.f32 %v2476_v3, %v2463_v10  ;;  %v4861_v10 = vld [vmem:[#allocation7 + $0x38] sm:$0xff] }
 0x1c3   :  { %3034 = vmatpush.bf16.msrb.mxu0 %v4861_v10 }
 0x1c4   :  { %v2490_v34 = vpop.f32.mrf.mxu1 }
 0x1c5   :  { %v2491_v14 = vadd.f32 %v2490_v34, %v2477_v11  ;;  %v4859_v11 = vld [vmem:[#allocation7 + $0x28] sm:$0xff] }
 0x1c7   :  { %3035 = vmatpush.bf16.msrb.mxu0 %v4860_v0 }
 0x1c9   :  { %v2478_v12 = vpop.f32.mrf.mxu0 }
 0x1ca   :  { %v2479_v13 = vadd.f32 %v2478_v12, %v2465_v31  ;;  %v4858_v12 = vld [vmem:[#allocation7 + $0x20] sm:$0xff]  ;;  %v4856_v31 = vld [vmem:[#allocation7 + $0x10] sm:$0xff] }
 0x1cb   :  { %3036 = vmatpush.bf16.msrb.mxu0 %v4859_v11 }
 0x1cc   :  { %v2492_v17 = vpop.f32.mrf.mxu1 }
 0x1cd   :  { %v2493_v18 = vadd.f32 %v2492_v17, %v2479_v13 }
 0x1cf   :  { %v2504_v61 = vpop.f32.mrf.mxu2  ;;  %3037 = vmatpush.bf16.msrb.mxu0 %v4858_v12 }
 0x1d0   :  { %v2505_v16 = vadd.f32 %v2504_v61, %v2491_v14  ;;  %v4857_v61 = vld [vmem:[#allocation7 + $0x18] sm:$0xff]  ;;  %v4854_v14 = vld [vmem:[#allocation7] sm:$0xff] }
 0x1d2   :  { %v2518_v41 = vpop.f32.mrf.mxu3 }
 0x1d3   :  { %v2519_v58 = vadd.f32 %v2518_v41, %v2505_v16  ;;  %3038 = vmatpush.bf16.msrb.mxu0 %v4857_v61  ;;  %v4855_v41 = vld [vmem:[#allocation7 + $0x8] sm:$0xff] }
 0x1d5   :  { %v2637_v2 = vmax.f32 %v2519_v58, 0.0 }
 0x1d7   :  { %v2506_v20 = vpop.f32.mrf.mxu2  ;;  %3039 = vmatpush.bf16.msrb.mxu0 %v4856_v31 }
 0x1d8   :  { %v2507_v22 = vadd.f32 %v2506_v20, %v2493_v18  ;;  %v4872_v18 = vld [vmem:[%s5191_s6] ss:$0 sm:$0xff] }
 0x1da   :  { %v2520_v24 = vpop.f32.mrf.mxu3 }
 0x1db   :  { %v2521_v25 = vadd.f32 %v2520_v24, %v2507_v22  ;;  %3040 = vmatpush.bf16.msrb.mxu0 %v4855_v41 }
 0x1dd   :  { %v2641_v19 = vmax.f32 %v2521_v25, 0.0 }
 0x1df   :  { %v2645_v28 = vpack.c.bf16 %v2641_v19, %v2637_v2  ;;  %3041 = vmatpush.bf16.msrb.mxu0 %v4854_v14 }
 0x1e1   :  { %2943 = vmatmul.bf16.vlgmr.msra.gmra.mxu2 %v2645_v28  ;;  %v2532_v33 = vpop.f32.mrf.mxu0 }
 0x1e2   :  { %v2533_v43 = vadd.f32 %v2532_v33, %v902_v39 }
 0x1e4   :  { %v2546_v36 = vpop.f32.mrf.mxu1 }
 0x1e5   :  { %v2547_v46 = vadd.f32 %v2546_v36, %v2533_v43  ;;  %v4873_v36 = vld [vmem:[%s5193_s8] ss:$0 sm:$0xff] }
 0x1e9   :  { %v2534_v38 = vpop.f32.mrf.mxu0 }
 0x1ea   :  { %v2535_v47 = vadd.f32 %v2534_v38, %v902_v39 }
 0x1ec   :  { %v2548_v44 = vpop.f32.mrf.mxu1 }
 0x1ed   :  { %v2549_v51 = vadd.f32 %v2548_v44, %v2535_v47 }
 0x1ef   :  { %v2560_v9 = vpop.f32.mrf.mxu2 }
 0x1f0   :  { %v2561_v49 = vadd.f32 %v2560_v9, %v2547_v46 }
 0x1f2   :  { %v2574_v40 = vpop.f32.mrf.mxu3 }
 0x1f3   :  { %v2575_v59 = vadd.f32 %v2574_v40, %v2561_v49 }
 0x1f7   :  { %v2562_v42 = vpop.f32.mrf.mxu2 }
 0x1f8   :  { %v2563_v55 = vadd.f32 %v2562_v42, %v2549_v51 }
 0x1fa   :  { %v2576_v50 = vpop.f32.mrf.mxu3 }
 0x1fb   :  { %v2577_v27 = vadd.f32 %v2576_v50, %v2563_v55 }
 0x201   :  { %v2588_v45 = vpop.f32.mrf.mxu0 }
 0x202   :  { %v2589_v23 = vadd.f32 %v2588_v45, %v2575_v59 }
 0x204   :  { %v2602_v52 = vpop.f32.mrf.mxu1 }
 0x205   :  { %v2603_v15 = vadd.f32 %v2602_v52, %v2589_v23 }
 0x209   :  { %v2590_v56 = vpop.f32.mrf.mxu0 }
 0x20a   :  { %v2591_v63 = vadd.f32 %v2590_v56, %v2577_v27 }
 0x20c   :  { %v2604_v30 = vpop.f32.mrf.mxu1 }
 0x20d   :  { %v2605_v1 = vadd.f32 %v2604_v30, %v2591_v63 }
 0x20f   :  { %v2616_v57 = vpop.f32.mrf.mxu2 }
 0x210   :  { %v2630_v48 = vpop.f32.mrf.mxu3  ;;  %v2617_v6 = vadd.f32 %v2616_v57, %v2603_v15 }
 0x212   :  { %v2631_v53 = vadd.f32 %v2630_v48, %v2617_v6 }
 0x214   :  { %v2638_v8 = vmax.f32 %v2631_v53, 0.0 }
 0x217   :  { %v2618_v3 = vpop.f32.mrf.mxu2 }
 0x218   :  { %v2619_v5 = vadd.f32 %v2618_v3, %v2605_v1  ;;  %v2632_v7 = vpop.f32.mrf.mxu3 }
 0x21a   :  { %v2633_v62 = vadd.f32 %v2632_v7, %v2619_v5 }
 0x21c   :  { %v2642_v26 = vmax.f32 %v2633_v62, 0.0 }
 0x21e   :  { %v2646_v34 = vpack.c.bf16 %v2642_v26, %v2638_v8 }
 0x220   :  { %2957 = vmatmul.bf16.vlgmr.msra.gmra.mxu3 %v2646_v34 }
 0x221   :  { %v2916_v13 = vpop.f32.mrf.mxu0 }
 0x222   :  { %v2917_v58 = vadd.f32 %v4872_v18, %v2916_v13 }
 0x223   :  { %v2930_v16 = vpop.f32.mrf.mxu1 }
 0x224   :  { %v2931_v25 = vadd.f32 %v2930_v16, %v2917_v58 }
 0x229   :  { %v2918_v20 = vpop.f32.mrf.mxu0 }
 0x22a   :  { %v2919_v24 = vadd.f32 %v4872_v18, %v2918_v20 }
 0x22b   :  { %v2932_v22 = vpop.f32.mrf.mxu1 }
 0x22c   :  { %v2933_v19 = vadd.f32 %v2932_v22, %v2919_v24 }
 0x264   :  { %v2944_v17 = vpop.f32.mrf.mxu2 }
 0x265   :  { %v2945_v28 = vadd.f32 %v2944_v17, %v2931_v25 }
 0x26c   :  { %v2946_v2 = vpop.f32.mrf.mxu2 }
 0x26d   :  { %v2947_v29 = vadd.f32 %v2946_v2, %v2933_v19 }
 0x2a3   :  { %v2958_v21 = vpop.f32.mrf.mxu3 }
 0x2a4   :  { %v2959_v54 = vadd.f32 %v2958_v21, %v2945_v28 }
 0x2a6   :  { %v2963_v33 = vmax.f32 %v2959_v54, 0.0 }
 0x2ab   :  { %v2960_v4 = vpop.f32.mrf.mxu3 }
 0x2ac   :  { %v2961_v32 = vadd.f32 %v2960_v4, %v2947_v29 }
 0x2ae   :  { %v2964_v60 = vmax.f32 %v2961_v32, 0.0 }
 0x2b0   :  { %v2965_v35 = vpack.c.bf16 %v2964_v60, %v2963_v33 }
 0x2b2   :  { %3042 = vmatmul.bf16.vlgmr.msrb.gmra.mxu0 %v2965_v35 }
 0x32f   :  { %v3043_v37 = vpop.f32.mrf.mxu0 }
 0x330   :  { %v3044_v38 = vadd.f32 %v4873_v36, %v3043_v37 }
 0x332   :  { %3048 = vst [vmem:[%s5194_s9] sm:$0xff] %v3044_v38 }
 0x337   :  { %v3045_v9 = vpop.f32.mrf.mxu0 }
 0x338   :  { %v3046_v39 = vadd.f32 %v4873_v36, %v3045_v9 }
 0x33a   :  { %3049 = vst [vmem:[%s5194_s9 + $0x8] sm:$0xff] %v3046_v39 }
 0x33b   :  { %3054 = vsyncpa [#allocation3], 1 }
 0x33c   :  { %3055 = vsyncpa [#allocation5], 1 }
 0x33d   :  { %3056 = vsyncpa [#allocation8], 1 }

</bundles_post_ra>
